<compile_context>
chip_gen: v6e
topology: v6e:2x2x1
jax: 0.10.0
libtpu: 0.0.40
codegen_flags: <defaults>
</compile_context>

<pallas_src>
import jax
import jax.numpy as jnp
from jax.experimental import pallas as pl
from jax.experimental.pallas import tpu as pltpu

KS = 3        # kernel size
PAD = 1       # spatial padding
EPS = 1e-5    # BatchNorm2d eps (PyTorch default)
LANES = 128   # TPU lane width
MB = 1 << 20
VMEM_TILE_BUDGET = 20 * MB   # conservative per-call working-set target


def _make_conv_stats_kernel(th, width, cin):
    """Phase 1: conv rows (3 K-slab matmuls) + per-image partial BN stats."""
    rows = th * width

    def kernel(xk_ref, wt_ref, y_ref, sum_ref, ssq_ref):
        # xk_ref : ((H+2)*W, 3*Cin) bf16  whole padded, kw-im2col'd image,
        #                                 resident in VMEM across row tiles.
        # wt_ref : (3, 3*Cin, Cp)   bf16  conv weight, one K-slab per kh.
        # y_ref  : (TH*W, Cp)       bf16  conv output rows for this tile.
        # sum_ref, ssq_ref : (1, Cp) f32  per-image channel sum / sum-of-sq.
        j = pl.program_id(1)
        base = j * rows

        acc = None
        for kh in range(KS):
            start = base + kh * width
            if width % 8 == 0:
                start = pl.multiple_of(start, 8)
            slab = xk_ref[pl.ds(start, rows), :]            # (TH*W, 3*Cin)
            d = jnp.dot(slab, wt_ref[kh], preferred_element_type=jnp.float32)
            acc = d if acc is None else acc + d
        y_ref[...] = acc.astype(y_ref.dtype)

        @pl.when(j == 0)
        def _init():
            sum_ref[...] = jnp.zeros_like(sum_ref)
            ssq_ref[...] = jnp.zeros_like(ssq_ref)

        sum_ref[...] += jnp.sum(acc, axis=0, keepdims=True)
        ssq_ref[...] += jnp.sum(acc * acc, axis=0, keepdims=True)

    return kernel


def _make_bn_relu_kernel(cout):
    """Phase 2: y * scale + shift, ReLU; writes only the real Cout channels."""

    def kernel(y_ref, scale_ref, shift_ref, o_ref):
        y = y_ref[:, :cout].astype(jnp.float32)
        o_ref[...] = jnp.maximum(y * scale_ref[...] + shift_ref[...], 0.0)

    return kernel


def _pick_th(h, width, cin, cp):
    """Largest height-tile dividing H whose phase-1 working set fits budget."""
    img_bytes = (h + 2 * PAD) * width * 3 * cin * 2      # resident bf16 slab
    wt_bytes = KS * KS * cin * cp * 2

    def est(th):
        rows = th * width
        return (2 * img_bytes + 2 * wt_bytes
                + 2 * rows * cp * 2            # double-buffered bf16 y block
                + KS * rows * 3 * cin * 2      # three live K-slabs
                + rows * cp * 4                # f32 accumulator
                + 8 * cp * 4)                  # stats

    for th in range(h, 0, -1):
        if h % th:
            continue
        if (th * width) % 8 and th != h:
            continue
        if est(th) <= VMEM_TILE_BUDGET:
            return th, est(th)
    return 1, est(1)


def _pick_rows_tile(rows, cp, cout):
    """Largest row tile (<= 8192) dividing N*H*W for the streaming phase 2."""

    def est(t):
        return 2 * t * cp * 2 + 2 * t * cout * 4 + t * cout * 4 + 8 * cout * 4

    t = min(rows, 8192)
    while t > 1:
        if rows % t == 0 and (t % 8 == 0 or t == rows) and est(t) <= VMEM_TILE_BUDGET:
            return t, est(t)
        t -= 1
    return 1, est(1)


def _vmem_limit(estimate_bytes):
    # Raise the scoped-VMEM limit above the 16/32 MiB defaults, but never
    # above v7x's 64 MiB physical VMEM.
    return int(min(64 * MB, max(32 * MB, 2 * estimate_bytes)))


@jax.jit
def conv_bn_relu(x_nchw, w_hwio, bias, gamma, beta):
    """Forward of ConvBNReLU (training-mode BN batch statistics).

    x_nchw: (N, Cin, H, W) f32
    w_hwio: (KH, KW, Cin, Cout) f32
    bias:   (Cout,) conv bias -- exactly cancelled by batch-stat BN, unused.
    gamma, beta: (Cout,) BN affine parameters.
    returns: (N, Cout, H, W) f32
    """
    del bias  # cancelled by the BN mean subtraction in the batch-stats forward
    n, cin, h, width = x_nchw.shape
    cout = w_hwio.shape[-1]
    # Lane-dense Cout for the MXU / intermediate.  NOTE: for production shapes
    # prefer Cout a multiple of 128 (256 on v6e/v7x) so cp == cout and there is
    # no padded-channel inflation.
    cp = ((cout + LANES - 1) // LANES) * LANES
    hw = h * width
    img_rows = (h + 2 * PAD) * width

    th, est1 = _pick_th(h, width, cin, cp)
    r = h // th

    # ---- wrapper glue: NCHW->NHWC, zero pad, kw-only im2col, bf16 -----------
    x_nhwc = jnp.transpose(x_nchw, (0, 2, 3, 1)).astype(jnp.bfloat16)
    xp = jnp.pad(x_nhwc, ((0, 0), (PAD, PAD), (PAD, PAD), (0, 0)))
    xk = jnp.concatenate(
        [xp[:, :, kw:kw + width, :] for kw in range(KS)], axis=-1)
    xk = xk.reshape(n, img_rows, KS * cin)                   # (N,(H+2)*W,3Cin)

    wt = w_hwio.reshape(KS, KS * cin, cout)                  # (3, 3Cin, Cout)
    wt = jnp.pad(wt, ((0, 0), (0, 0), (0, cp - cout))).astype(jnp.bfloat16)

    # ---- phase 1: conv rows (bf16) + per-image partial BN stats (f32) -------
    conv_rows, psum, pssq = pl.pallas_call(
        _make_conv_stats_kernel(th, width, cin),
        out_shape=(
            jax.ShapeDtypeStruct((n, hw, cp), jnp.bfloat16),
            jax.ShapeDtypeStruct((n, 1, cp), jnp.float32),
            jax.ShapeDtypeStruct((n, 1, cp), jnp.float32),
        ),
        grid=(n, r),
        in_specs=[
            pl.BlockSpec((None, img_rows, KS * cin), lambda i, j: (i, 0, 0)),
            pl.BlockSpec((KS, KS * cin, cp), lambda i, j: (0, 0, 0)),
        ],
        out_specs=(
            pl.BlockSpec((None, th * width, cp), lambda i, j: (i, j, 0)),
            pl.BlockSpec((None, 1, cp), lambda i, j: (i, 0, 0)),
            pl.BlockSpec((None, 1, cp), lambda i, j: (i, 0, 0)),
        ),
        compiler_params=pltpu.CompilerParams(
            dimension_semantics=("parallel", "arbitrary"),
            vmem_limit_bytes=_vmem_limit(est1)),
    )(xk, wt)

    # ---- tiny cross-image reduction + BN fold (O(Cout) work, wrapper-side) --
    count = jnp.float32(n * hw)
    mean = jnp.sum(psum[:, 0, :cout], axis=0) / count
    var = jnp.maximum(jnp.sum(pssq[:, 0, :cout], axis=0) / count - mean * mean,
                      0.0)
    inv_std = jax.lax.rsqrt(var + EPS)
    scale = (gamma * inv_std).reshape(1, cout)
    shift = (beta - mean * gamma * inv_std).reshape(1, cout)

    # ---- phase 2: normalize + affine + ReLU over collapsed N*H*W rows -------
    rows2 = n * hw
    tr2, est2 = _pick_rows_tile(rows2, cp, cout)
    out2 = pl.pallas_call(
        _make_bn_relu_kernel(cout),
        out_shape=jax.ShapeDtypeStruct((rows2, cout), jnp.float32),
        grid=(rows2 // tr2,),
        in_specs=[
            pl.BlockSpec((tr2, cp), lambda i: (i, 0)),
            pl.BlockSpec((1, cout), lambda i: (0, 0)),
            pl.BlockSpec((1, cout), lambda i: (0, 0)),
        ],
        out_specs=pl.BlockSpec((tr2, cout), lambda i: (i, 0)),
        compiler_params=pltpu.CompilerParams(
            dimension_semantics=("parallel",),
            vmem_limit_bytes=_vmem_limit(est2)),
    )(conv_rows.reshape(rows2, cp), scale, shift)

    # ---- wrapper metadata: back to NCHW --------------------------------------
    out_nhwc = out2.reshape(n, h, width, cout)
    return jnp.transpose(out_nhwc, (0, 3, 1, 2))


if __name__ == "__main__":
    key = jax.random.PRNGKey(0)
    k_x, k_w, k_b = jax.random.split(key, 3)

    # Small shapes consistent with the module: batch=2, in=4, out=8, 16x16.
    N, CIN, COUT, H, W = 2, 4, 8, 16, 16

    x = jax.random.normal(k_x, (N, CIN, H, W), jnp.float32)

    # Deterministic PyTorch-ish parameter init.
    fan_in = CIN * KS * KS
    bound = 1.0 / (fan_in ** 0.5)
    w_oihw = jax.random.uniform(k_w, (COUT, CIN, KS, KS), jnp.float32,
                                minval=-bound, maxval=bound)
    w_hwio = jnp.transpose(w_oihw, (2, 3, 1, 0))
    bias = jax.random.uniform(k_b, (COUT,), jnp.float32,
                              minval=-bound, maxval=bound)
    gamma = jnp.ones((COUT,), jnp.float32)   # BatchNorm2d default init
    beta = jnp.zeros((COUT,), jnp.float32)

    out = conv_bn_relu(x, w_hwio, bias, gamma, beta)
    jax.block_until_ready(out)

    assert out.shape == (N, COUT, H, W), out.shape
    assert out.dtype == jnp.float32

    # Pure-JAX f32 reference (conv + bias + training-mode BN + ReLU).
    ref_conv = jax.lax.conv_general_dilated(
        x, w_oihw, window_strides=(1, 1), padding=((PAD, PAD), (PAD, PAD)),
        dimension_numbers=("NCHW", "OIHW", "NCHW"),
        precision=jax.lax.Precision.HIGHEST) + bias.reshape(1, COUT, 1, 1)
    m = jnp.mean(ref_conv, axis=(0, 2, 3), keepdims=True)
    v = jnp.mean((ref_conv - m) ** 2, axis=(0, 2, 3), keepdims=True)
    ref = jnp.maximum(
        (ref_conv - m) * jax.lax.rsqrt(v + EPS) * gamma.reshape(1, COUT, 1, 1)
        + beta.reshape(1, COUT, 1, 1), 0.0)

    # bf16 operands + bf16 intermediate -> use a scaled tolerance vs the f32
    # reference (real indexing bugs would produce O(1) errors).
    err = float(jnp.max(jnp.abs(out - ref) / (1.0 + jnp.abs(ref))))
    assert err < 5e-2, err

    print("KERNEL_OK")
</pallas_src>

<mosaic_0001>
module attributes {stable_mosaic.version = 11 : i64} {
  func.func @kernel(%arg0: i32, %arg1: i32, %arg2: memref<1x288x12xbf16, #tpu.memory_space<vmem>>, %arg3: memref<3x12x128xbf16, #tpu.memory_space<vmem>>, %arg4: memref<1x256x128xbf16, #tpu.memory_space<vmem>>, %arg5: memref<1x1x128xf32, #tpu.memory_space<vmem>>, %arg6: memref<1x1x128xf32, #tpu.memory_space<vmem>>) attributes {dimension_semantics = [#tpu.dimension_semantics<parallel>, #tpu.dimension_semantics<arbitrary>], iteration_bounds = array<i64: 2, 1>, scalar_prefetch = 0 : i64, scratch_operands = 0 : i64, tpu.core_type = #tpu.core_type<tc>, window_params = [{transform_indices = @transform_0, window_bounds = array<i64: 1, 288, 12>}, {pipeline_mode = #tpu.pipeline_mode<synchronous>, transform_indices = @transform_1, window_bounds = array<i64: 3, 12, 128>}, {transform_indices = @transform_2, window_bounds = array<i64: 1, 256, 128>}, {transform_indices = @transform_3, window_bounds = array<i64: 1, 1, 128>}, {transform_indices = @transform_4, window_bounds = array<i64: 1, 1, 128>}]} {
    %c256_i32 = arith.constant 256 : i32
    %0 = arith.muli %arg1, %c256_i32 : i32
    %c0_i32 = arith.constant 0 : i32
    %1 = arith.addi %0, %c0_i32 : i32
    %2 = tpu.assume_multiple %1, 8 : i32
    %c0 = arith.constant 0 : index
    %3 = arith.index_cast %2 : i32 to index
    %c0_0 = arith.constant 0 : index
    %4 = vector.load %arg2[%c0, %3, %c0_0] : memref<1x288x12xbf16, #tpu.memory_space<vmem>>, vector<1x256x12xbf16>
    %5 = vector.shape_cast %4 : vector<1x256x12xbf16> to vector<256x12xbf16>
    %c0_1 = arith.constant 0 : index
    %c0_2 = arith.constant 0 : index
    %c0_3 = arith.constant 0 : index
    %6 = vector.load %arg3[%c0_1, %c0_2, %c0_3] : memref<3x12x128xbf16, #tpu.memory_space<vmem>>, vector<1x12x128xbf16>
    %7 = vector.shape_cast %6 : vector<1x12x128xbf16> to vector<12x128xbf16>
    %cst = arith.constant dense<0.000000e+00> : vector<256x128xf32>
    %8 = tpu.matmul %5, %7, %cst {dimension_numbers = #tpu.dot_dimension_numbers<[1], [0], [0], [1], [0, 0, 1, 1], [], []>} : vector<256x12xbf16>, vector<12x128xbf16>, vector<256x128xf32> -> vector<256x128xf32>
    %c16_i32 = arith.constant 16 : i32
    %9 = arith.addi %0, %c16_i32 : i32
    %10 = tpu.assume_multiple %9, 8 : i32
    %c0_4 = arith.constant 0 : index
    %11 = arith.index_cast %10 : i32 to index
    %c0_5 = arith.constant 0 : index
    %12 = vector.load %arg2[%c0_4, %11, %c0_5] : memref<1x288x12xbf16, #tpu.memory_space<vmem>>, vector<1x256x12xbf16>
    %13 = vector.shape_cast %12 : vector<1x256x12xbf16> to vector<256x12xbf16>
    %c1 = arith.constant 1 : index
    %c0_6 = arith.constant 0 : index
    %c0_7 = arith.constant 0 : index
    %14 = vector.load %arg3[%c1, %c0_6, %c0_7] : memref<3x12x128xbf16, #tpu.memory_space<vmem>>, vector<1x12x128xbf16>
    %15 = vector.shape_cast %14 : vector<1x12x128xbf16> to vector<12x128xbf16>
    %cst_8 = arith.constant dense<0.000000e+00> : vector<256x128xf32>
    %16 = tpu.matmul %13, %15, %cst_8 {dimension_numbers = #tpu.dot_dimension_numbers<[1], [0], [0], [1], [0, 0, 1, 1], [], []>} : vector<256x12xbf16>, vector<12x128xbf16>, vector<256x128xf32> -> vector<256x128xf32>
    %17 = arith.addf %8, %16 : vector<256x128xf32>
    %c32_i32 = arith.constant 32 : i32
    %18 = arith.addi %0, %c32_i32 : i32
    %19 = tpu.assume_multiple %18, 8 : i32
    %c0_9 = arith.constant 0 : index
    %20 = arith.index_cast %19 : i32 to index
    %c0_10 = arith.constant 0 : index
    %21 = vector.load %arg2[%c0_9, %20, %c0_10] : memref<1x288x12xbf16, #tpu.memory_space<vmem>>, vector<1x256x12xbf16>
    %22 = vector.shape_cast %21 : vector<1x256x12xbf16> to vector<256x12xbf16>
    %c2 = arith.constant 2 : index
    %c0_11 = arith.constant 0 : index
    %c0_12 = arith.constant 0 : index
    %23 = vector.load %arg3[%c2, %c0_11, %c0_12] : memref<3x12x128xbf16, #tpu.memory_space<vmem>>, vector<1x12x128xbf16>
    %24 = vector.shape_cast %23 : vector<1x12x128xbf16> to vector<12x128xbf16>
    %cst_13 = arith.constant dense<0.000000e+00> : vector<256x128xf32>
    %25 = tpu.matmul %22, %24, %cst_13 {dimension_numbers = #tpu.dot_dimension_numbers<[1], [0], [0], [1], [0, 0, 1, 1], [], []>} : vector<256x12xbf16>, vector<12x128xbf16>, vector<256x128xf32> -> vector<256x128xf32>
    %26 = arith.addf %17, %25 : vector<256x128xf32>
    %27 = arith.truncf %26 : vector<256x128xf32> to vector<256x128xbf16>
    %c0_14 = arith.constant 0 : index
    %c0_15 = arith.constant 0 : index
    %c0_16 = arith.constant 0 : index
    %28 = vector.load %arg4[%c0_14, %c0_15, %c0_16] : memref<1x256x128xbf16, #tpu.memory_space<vmem>>, vector<1x256x128xbf16>
    %29 = vector.shape_cast %28 : vector<1x256x128xbf16> to vector<256x128xbf16>
    %30 = vector.shape_cast %27 : vector<256x128xbf16> to vector<1x256x128xbf16>
    tpu.vector_store %arg4[%c0_14, %c0_15, %c0_16], %30 {strides = array<i32>} : memref<1x256x128xbf16, #tpu.memory_space<vmem>>, vector<1x256x128xbf16>,
    %c0_i32_17 = arith.constant 0 : i32
    %31 = arith.cmpi eq, %arg1, %c0_i32_17 : i32
    %32 = arith.extui %31 : i1 to i32
    %c0_i32_18 = arith.constant 0 : i32
    %33 = arith.cmpi ne, %32, %c0_i32_18 : i32
    scf.if %33 {
      %cst_33 = arith.constant 0.000000e+00 : f32
      %51 = vector.broadcast %cst_33 : f32 to vector<1x128xf32>
      %c0_34 = arith.constant 0 : index
      %c0_35 = arith.constant 0 : index
      %c0_36 = arith.constant 0 : index
      %52 = vector.load %arg5[%c0_34, %c0_35, %c0_36] : memref<1x1x128xf32, #tpu.memory_space<vmem>>, vector<1x1x128xf32>
      %53 = vector.shape_cast %52 : vector<1x1x128xf32> to vector<1x128xf32>
      %54 = vector.shape_cast %51 : vector<1x128xf32> to vector<1x1x128xf32>
      tpu.vector_store %arg5[%c0_34, %c0_35, %c0_36], %54 {strides = array<i32>} : memref<1x1x128xf32, #tpu.memory_space<vmem>>, vector<1x1x128xf32>,
      %cst_37 = arith.constant 0.000000e+00 : f32
      %55 = vector.broadcast %cst_37 : f32 to vector<1x128xf32>
      %c0_38 = arith.constant 0 : index
      %c0_39 = arith.constant 0 : index
      %c0_40 = arith.constant 0 : index
      %56 = vector.load %arg6[%c0_38, %c0_39, %c0_40] : memref<1x1x128xf32, #tpu.memory_space<vmem>>, vector<1x1x128xf32>
      %57 = vector.shape_cast %56 : vector<1x1x128xf32> to vector<1x128xf32>
      %58 = vector.shape_cast %55 : vector<1x128xf32> to vector<1x1x128xf32>
      tpu.vector_store %arg6[%c0_38, %c0_39, %c0_40], %58 {strides = array<i32>} : memref<1x1x128xf32, #tpu.memory_space<vmem>>, vector<1x1x128xf32>,
    } else {
    }
    %c0_19 = arith.constant 0 : index
    %c0_20 = arith.constant 0 : index
    %c0_21 = arith.constant 0 : index
    %34 = vector.load %arg5[%c0_19, %c0_20, %c0_21] : memref<1x1x128xf32, #tpu.memory_space<vmem>>, vector<1x1x128xf32>
    %35 = vector.shape_cast %34 : vector<1x1x128xf32> to vector<1x128xf32>
    %cst_22 = arith.constant dense<0.000000e+00> : vector<128xf32>
    %36 = vector.multi_reduction <add>, %26, %cst_22 [0] : vector<256x128xf32> to vector<128xf32>
    %37 = vector.shape_cast %36 : vector<128xf32> to vector<1x128xf32>
    %38 = arith.addf %35, %37 : vector<1x128xf32>
    %c0_23 = arith.constant 0 : index
    %c0_24 = arith.constant 0 : index
    %c0_25 = arith.constant 0 : index
    %39 = vector.load %arg5[%c0_23, %c0_24, %c0_25] : memref<1x1x128xf32, #tpu.memory_space<vmem>>, vector<1x1x128xf32>
    %40 = vector.shape_cast %39 : vector<1x1x128xf32> to vector<1x128xf32>
    %41 = vector.shape_cast %38 : vector<1x128xf32> to vector<1x1x128xf32>
    tpu.vector_store %arg5[%c0_23, %c0_24, %c0_25], %41 {strides = array<i32>} : memref<1x1x128xf32, #tpu.memory_space<vmem>>, vector<1x1x128xf32>,
    %c0_26 = arith.constant 0 : index
    %c0_27 = arith.constant 0 : index
    %c0_28 = arith.constant 0 : index
    %42 = vector.load %arg6[%c0_26, %c0_27, %c0_28] : memref<1x1x128xf32, #tpu.memory_space<vmem>>, vector<1x1x128xf32>
    %43 = vector.shape_cast %42 : vector<1x1x128xf32> to vector<1x128xf32>
    %44 = arith.mulf %26, %26 : vector<256x128xf32>
    %cst_29 = arith.constant dense<0.000000e+00> : vector<128xf32>
    %45 = vector.multi_reduction <add>, %44, %cst_29 [0] : vector<256x128xf32> to vector<128xf32>
    %46 = vector.shape_cast %45 : vector<128xf32> to vector<1x128xf32>
    %47 = arith.addf %43, %46 : vector<1x128xf32>
    %c0_30 = arith.constant 0 : index
    %c0_31 = arith.constant 0 : index
    %c0_32 = arith.constant 0 : index
    %48 = vector.load %arg6[%c0_30, %c0_31, %c0_32] : memref<1x1x128xf32, #tpu.memory_space<vmem>>, vector<1x1x128xf32>
    %49 = vector.shape_cast %48 : vector<1x1x128xf32> to vector<1x128xf32>
    %50 = vector.shape_cast %47 : vector<1x128xf32> to vector<1x1x128xf32>
    tpu.vector_store %arg6[%c0_30, %c0_31, %c0_32], %50 {strides = array<i32>} : memref<1x1x128xf32, #tpu.memory_space<vmem>>, vector<1x1x128xf32>,
    return
  }
  func.func @transform_0(%arg0: i32, %arg1: i32) -> (i32, i32, i32) {
    %c0_i32 = arith.constant 0 : i32
    %c0_i32_0 = arith.constant 0 : i32
    %c0_i32_1 = arith.constant 0 : i32
    return %arg0, %c0_i32, %c0_i32_0 : i32, i32, i32
  }
  func.func @transform_1(%arg0: i32, %arg1: i32) -> (i32, i32, i32) {
    %c0_i32 = arith.constant 0 : i32
    %c0_i32_0 = arith.constant 0 : i32
    %c0_i32_1 = arith.constant 0 : i32
    %c0_i32_2 = arith.constant 0 : i32
    return %c0_i32, %c0_i32_0, %c0_i32_1 : i32, i32, i32
  }
  func.func @transform_2(%arg0: i32, %arg1: i32) -> (i32, i32, i32) {
    %c0_i32 = arith.constant 0 : i32
    %c0_i32_0 = arith.constant 0 : i32
    return %arg0, %arg1, %c0_i32 : i32, i32, i32
  }
  func.func @transform_3(%arg0: i32, %arg1: i32) -> (i32, i32, i32) {
    %c0_i32 = arith.constant 0 : i32
    %c0_i32_0 = arith.constant 0 : i32
    %c0_i32_1 = arith.constant 0 : i32
    return %arg0, %c0_i32, %c0_i32_0 : i32, i32, i32
  }
  func.func @transform_4(%arg0: i32, %arg1: i32) -> (i32, i32, i32) {
    %c0_i32 = arith.constant 0 : i32
    %c0_i32_0 = arith.constant 0 : i32
    %c0_i32_1 = arith.constant 0 : i32
    return %arg0, %c0_i32, %c0_i32_0 : i32, i32, i32
  }
}

module attributes {stable_mosaic.version = 11 : i64} {
  func.func @kernel(%arg0: i32, %arg1: memref<512x128xbf16, #tpu.memory_space<vmem>>, %arg2: memref<1x8xf32, #tpu.memory_space<vmem>>, %arg3: memref<1x8xf32, #tpu.memory_space<vmem>>, %arg4: memref<512x8xf32, #tpu.memory_space<vmem>>) attributes {dimension_semantics = [#tpu.dimension_semantics<parallel>], iteration_bounds = array<i64: 1>, scalar_prefetch = 0 : i64, scratch_operands = 0 : i64, tpu.core_type = #tpu.core_type<tc>, window_params = [{transform_indices = @transform_0, window_bounds = array<i64: 512, 128>}, {pipeline_mode = #tpu.pipeline_mode<synchronous>, transform_indices = @transform_1, window_bounds = array<i64: 1, 8>}, {pipeline_mode = #tpu.pipeline_mode<synchronous>, transform_indices = @transform_2, window_bounds = array<i64: 1, 8>}, {transform_indices = @transform_3, window_bounds = array<i64: 512, 8>}]} {
    %c0 = arith.constant 0 : index
    %c0_0 = arith.constant 0 : index
    %0 = vector.load %arg1[%c0, %c0_0] : memref<512x128xbf16, #tpu.memory_space<vmem>>, vector<512x8xbf16>
    %1 = arith.extf %0 : vector<512x8xbf16> to vector<512x8xf32>
    %c0_1 = arith.constant 0 : index
    %c0_2 = arith.constant 0 : index
    %2 = vector.load %arg2[%c0_1, %c0_2] : memref<1x8xf32, #tpu.memory_space<vmem>>, vector<1x8xf32>
    %3 = vector.broadcast %2 : vector<1x8xf32> to vector<512x8xf32>
    %4 = arith.mulf %1, %3 : vector<512x8xf32>
    %c0_3 = arith.constant 0 : index
    %c0_4 = arith.constant 0 : index
    %5 = vector.load %arg3[%c0_3, %c0_4] : memref<1x8xf32, #tpu.memory_space<vmem>>, vector<1x8xf32>
    %6 = vector.broadcast %5 : vector<1x8xf32> to vector<512x8xf32>
    %7 = arith.addf %4, %6 : vector<512x8xf32>
    %cst = arith.constant 0.000000e+00 : f32
    %8 = vector.broadcast %cst : f32 to vector<512x8xf32>
    %9 = arith.maximumf %7, %8 : vector<512x8xf32>
    %c0_5 = arith.constant 0 : index
    %c0_6 = arith.constant 0 : index
    %10 = vector.load %arg4[%c0_5, %c0_6] : memref<512x8xf32, #tpu.memory_space<vmem>>, vector<512x8xf32>
    tpu.vector_store %arg4[%c0_5, %c0_6], %9 {strides = array<i32>} : memref<512x8xf32, #tpu.memory_space<vmem>>, vector<512x8xf32>,
    return
  }
  func.func @transform_0(%arg0: i32) -> (i32, i32) {
    %c0_i32 = arith.constant 0 : i32
    %c0_i32_0 = arith.constant 0 : i32
    return %arg0, %c0_i32 : i32, i32
  }
  func.func @transform_1(%arg0: i32) -> (i32, i32) {
    %c0_i32 = arith.constant 0 : i32
    %c0_i32_0 = arith.constant 0 : i32
    %c0_i32_1 = arith.constant 0 : i32
    return %c0_i32, %c0_i32_0 : i32, i32
  }
  func.func @transform_2(%arg0: i32) -> (i32, i32) {
    %c0_i32 = arith.constant 0 : i32
    %c0_i32_0 = arith.constant 0 : i32
    %c0_i32_1 = arith.constant 0 : i32
    return %c0_i32, %c0_i32_0 : i32, i32
  }
  func.func @transform_3(%arg0: i32) -> (i32, i32) {
    %c0_i32 = arith.constant 0 : i32
    %c0_i32_0 = arith.constant 0 : i32
    return %arg0, %c0_i32 : i32, i32
  }
}

</mosaic_0001>

<bundles_post_ra>
// kernel: conv_bn_relu.3
= control target key start
LH: loop header
LB: loop body
LE: loop exit
PB: predicated region body
PF: predicated region fallthrough
CT: control target
= control target key end

     0   :  { %vm348_vm0 = vcmask 64512   ;;  %s1088_s0 = inlined_call_operand.vmem [shape: bf16[512,128], index: 0, kind: input, shape index: {}]   ;;  %s1089_s1 = inlined_call_operand.vmem [shape: f32[1,8], index: 1, kind: input, shape index: {}]   ;;  %s1090_s2 = inlined_call_operand.vmem [shape: f32[1,8], index: 2, kind: input, shape index: {}]   ;;  %s1091_s3 = inlined_call_operand.vmem [shape: f32[512,8], index: 3, kind: output, shape index: {}]  }
   0x1   :  { %v420_v0 = vld [vmem:[%s1088_s0] sm:$0xff]   ;;  %v547_v4 = vld [vmem:[%s1088_s0 + $0x8] sm:$0xff]   ;;  %v548_v5 = vld [vmem:[%s1088_s0 + $0x10] sm:$0xff]  }
   0x2   :  { %v604_v1 = vld [vmem:[%s1089_s1] ss:$0 sm:$0xff]  ;;  %v421_v2 = vunpack.c.l.bf16 %v420_v0  ;;  %v422_v3 = vunpack.c.h.bf16 %v420_v0  ;;  %v549_v6 = vld [vmem:[%s1088_s0 + $0x18] sm:$0xff]   ;;  %v425_v8 = vunpack.c.l.bf16 %v547_v4  ;;  %v426_v9 = vunpack.c.h.bf16 %v547_v4  ;;  %v551_v33 = vld [vmem:[%s1088_s0 + $0x28] sm:$0xff]  }
   0x3   :  { %v618_v7 = vld [vmem:[%s1090_s2] ss:$0 sm:$0xff]  ;;  %v429_v10 = vunpack.c.l.bf16 %v548_v5  ;;  %v430_v11 = vunpack.c.h.bf16 %v548_v5  ;;  %v433_v14 = vunpack.c.l.bf16 %v549_v6  ;;  %v434_v15 = vunpack.c.h.bf16 %v549_v6  ;;  %v552_v34 = vld [vmem:[%s1088_s0 + $0x30] sm:$0xff]   ;;  %v553_v39 = vld [vmem:[%s1088_s0 + $0x38] sm:$0xff]  }
   0x4   :  { %v149_v12 = vmul.f32 %v421_v2, %v604_v1  ;;  %v150_v13 = vmul.f32 %v422_v3, %v604_v1  ;;  %v151_v16 = vmul.f32 %v425_v8, %v604_v1  ;;  %v152_v17 = vmul.f32 %v426_v9, %v604_v1  ;;  %v550_v28 = vld [vmem:[%s1088_s0 + $0x20] sm:$0xff]   ;;  %v555_v6 = vld [vmem:[%s1088_s0 + $0x48] sm:$0xff]   ;;  %v556_v8 = vld [vmem:[%s1088_s0 + $0x50] sm:$0xff]  }
   0x5   :  { %v153_v18 = vmul.f32 %v429_v10, %v604_v1  ;;  %v154_v19 = vmul.f32 %v430_v11, %v604_v1  ;;  %v155_v22 = vmul.f32 %v433_v14, %v604_v1  ;;  %v156_v23 = vmul.f32 %v434_v15, %v604_v1  ;;  %v554_v0 = vld [vmem:[%s1088_s0 + $0x40] sm:$0xff]  }
   0x6   :  { %v220_v20 = vadd.f32 %v618_v7, %v149_v12  ;;  %v221_v21 = vadd.f32 %v618_v7, %v150_v13  ;;  %v222_v24 = vadd.f32 %v618_v7, %v151_v16  ;;  %v223_v25 = vadd.f32 %v618_v7, %v152_v17  ;;  %v557_v13 = vld [vmem:[%s1088_s0 + $0x58] sm:$0xff]  }
   0x7   :  { %v224_v26 = vadd.f32 %v618_v7, %v153_v18  ;;  %v225_v27 = vadd.f32 %v618_v7, %v154_v19  ;;  %v226_v31 = vadd.f32 %v618_v7, %v155_v22  ;;  %v227_v32 = vadd.f32 %v618_v7, %v156_v23 }
   0x8   :  { %v284_v29 = vmax.f32 %v220_v20, 0.0  ;;  %v285_v30 = vmax.f32 %v221_v21, 0.0  ;;  %v286_v35 = vmax.f32 %v222_v24, 0.0  ;;  %v287_v36 = vmax.f32 %v223_v25, 0.0 }
   0x9   :  { %v288_v37 = vmax.f32 %v224_v26, 0.0  ;;  %v289_v38 = vmax.f32 %v225_v27, 0.0  ;;  %v290_v40 = vmax.f32 %v226_v31, 0.0  ;;  %v291_v41 = vmax.f32 %v227_v32, 0.0 }
   0xa   :  { %349 = vst.msk [vmem:[%s1091_s3] sm:$0xff] %vm348_vm0, %v284_v29  ;;  %350 = vst.msk [vmem:[%s1091_s3 + $0x8] sm:$0xff] %vm348_vm0, %v285_v30  ;;  %v437_v42 = vunpack.c.l.bf16 %v550_v28  ;;  %v438_v43 = vunpack.c.h.bf16 %v550_v28  ;;  %v441_v44 = vunpack.c.l.bf16 %v551_v33  ;;  %v442_v45 = vunpack.c.h.bf16 %v551_v33 }
   0xb   :  { %351 = vst.msk [vmem:[%s1091_s3 + $0x10] sm:$0xff] %vm348_vm0, %v286_v35  ;;  %352 = vst.msk [vmem:[%s1091_s3 + $0x18] sm:$0xff] %vm348_vm0, %v287_v36  ;;  %v445_v46 = vunpack.c.l.bf16 %v552_v34  ;;  %v446_v47 = vunpack.c.h.bf16 %v552_v34  ;;  %v449_v50 = vunpack.c.l.bf16 %v553_v39  ;;  %v450_v51 = vunpack.c.h.bf16 %v553_v39 }
   0xc   :  { %353 = vst.msk [vmem:[%s1091_s3 + $0x20] sm:$0xff] %vm348_vm0, %v288_v37  ;;  %354 = vst.msk [vmem:[%s1091_s3 + $0x28] sm:$0xff] %vm348_vm0, %v289_v38  ;;  %v157_v48 = vmul.f32 %v437_v42, %v604_v1  ;;  %v158_v49 = vmul.f32 %v438_v43, %v604_v1  ;;  %v159_v52 = vmul.f32 %v441_v44, %v604_v1  ;;  %v453_v16 = vunpack.c.l.bf16 %v554_v0  ;;  %v558_v38 = vld [vmem:[%s1088_s0 + $0x60] sm:$0xff]   ;;  %v559_v43 = vld [vmem:[%s1088_s0 + $0x68] sm:$0xff]  }
   0xd   :  { %355 = vst.msk [vmem:[%s1091_s3 + $0x30] sm:$0xff] %vm348_vm0, %v290_v40  ;;  %356 = vst.msk [vmem:[%s1091_s3 + $0x38] sm:$0xff] %vm348_vm0, %v291_v41  ;;  %v160_v53 = vmul.f32 %v442_v45, %v604_v1  ;;  %v161_v54 = vmul.f32 %v445_v46, %v604_v1  ;;  %v162_v55 = vmul.f32 %v446_v47, %v604_v1  ;;  %v454_v17 = vunpack.c.h.bf16 %v554_v0  ;;  %v560_v44 = vld [vmem:[%s1088_s0 + $0x70] sm:$0xff]  }
   0xe   :  { %v228_v56 = vadd.f32 %v618_v7, %v157_v48  ;;  %v229_v57 = vadd.f32 %v618_v7, %v158_v49  ;;  %v163_v58 = vmul.f32 %v449_v50, %v604_v1  ;;  %v164_v59 = vmul.f32 %v450_v51, %v604_v1  ;;  %v561_v49 = vld [vmem:[%s1088_s0 + $0x78] sm:$0xff]  }
   0xf   :  { %v230_v60 = vadd.f32 %v618_v7, %v159_v52  ;;  %v231_v61 = vadd.f32 %v618_v7, %v160_v53  ;;  %v232_v62 = vadd.f32 %v618_v7, %v161_v54  ;;  %v233_v63 = vadd.f32 %v618_v7, %v162_v55 }
  0x10   :  { %v292_v2 = vmax.f32 %v228_v56, 0.0  ;;  %v293_v3 = vmax.f32 %v229_v57, 0.0  ;;  %v234_v4 = vadd.f32 %v618_v7, %v163_v58  ;;  %v235_v5 = vadd.f32 %v618_v7, %v164_v59 }
  0x11   :  { %v294_v9 = vmax.f32 %v230_v60, 0.0  ;;  %v295_v10 = vmax.f32 %v231_v61, 0.0  ;;  %v296_v11 = vmax.f32 %v232_v62, 0.0  ;;  %v297_v12 = vmax.f32 %v233_v63, 0.0 }
  0x12   :  { %357 = vst.msk [vmem:[%s1091_s3 + $0x40] sm:$0xff] %vm348_vm0, %v292_v2  ;;  %358 = vst.msk [vmem:[%s1091_s3 + $0x48] sm:$0xff] %vm348_vm0, %v293_v3  ;;  %v298_v14 = vmax.f32 %v234_v4, 0.0  ;;  %v299_v15 = vmax.f32 %v235_v5, 0.0  ;;  %v457_v18 = vunpack.c.l.bf16 %v555_v6  ;;  %v458_v19 = vunpack.c.h.bf16 %v555_v6 }
  0x13   :  { %359 = vst.msk [vmem:[%s1091_s3 + $0x50] sm:$0xff] %vm348_vm0, %v294_v9  ;;  %360 = vst.msk [vmem:[%s1091_s3 + $0x58] sm:$0xff] %vm348_vm0, %v295_v10  ;;  %v461_v20 = vunpack.c.l.bf16 %v556_v8  ;;  %v462_v21 = vunpack.c.h.bf16 %v556_v8  ;;  %v165_v22 = vmul.f32 %v453_v16, %v604_v1  ;;  %v166_v23 = vmul.f32 %v454_v17, %v604_v1  ;;  %v563_v17 = vld [vmem:[%s1088_s0 + $0x88] sm:$0xff]  }
  0x14   :  { %361 = vst.msk [vmem:[%s1091_s3 + $0x60] sm:$0xff] %vm348_vm0, %v296_v11  ;;  %362 = vst.msk [vmem:[%s1091_s3 + $0x68] sm:$0xff] %vm348_vm0, %v297_v12  ;;  %v465_v24 = vunpack.c.l.bf16 %v557_v13  ;;  %v466_v25 = vunpack.c.h.bf16 %v557_v13  ;;  %v167_v26 = vmul.f32 %v457_v18, %v604_v1  ;;  %v168_v27 = vmul.f32 %v458_v19, %v604_v1  ;;  %v562_v12 = vld [vmem:[%s1088_s0 + $0x80] sm:$0xff]   ;;  %v564_v18 = vld [vmem:[%s1088_s0 + $0x90] sm:$0xff]  }
  0x15   :  { %363 = vst.msk [vmem:[%s1091_s3 + $0x70] sm:$0xff] %vm348_vm0, %v298_v14  ;;  %364 = vst.msk [vmem:[%s1091_s3 + $0x78] sm:$0xff] %vm348_vm0, %v299_v15  ;;  %v169_v28 = vmul.f32 %v461_v20, %v604_v1  ;;  %v170_v29 = vmul.f32 %v462_v21, %v604_v1  ;;  %v236_v30 = vadd.f32 %v618_v7, %v165_v22  ;;  %v469_v52 = vunpack.c.l.bf16 %v558_v38 }
  0x16   :  { %v237_v31 = vadd.f32 %v618_v7, %v166_v23  ;;  %v171_v32 = vmul.f32 %v465_v24, %v604_v1  ;;  %v172_v33 = vmul.f32 %v466_v25, %v604_v1  ;;  %v238_v34 = vadd.f32 %v618_v7, %v167_v26  ;;  %v565_v23 = vld [vmem:[%s1088_s0 + $0x98] sm:$0xff]  }
  0x17   :  { %v239_v35 = vadd.f32 %v618_v7, %v168_v27  ;;  %v240_v36 = vadd.f32 %v618_v7, %v169_v28  ;;  %v241_v37 = vadd.f32 %v618_v7, %v170_v29  ;;  %v300_v39 = vmax.f32 %v236_v30, 0.0 }
  0x18   :  { %v301_v40 = vmax.f32 %v237_v31, 0.0  ;;  %v242_v41 = vadd.f32 %v618_v7, %v171_v32  ;;  %v243_v42 = vadd.f32 %v618_v7, %v172_v33  ;;  %v302_v45 = vmax.f32 %v238_v34, 0.0 }
  0x19   :  { %v303_v46 = vmax.f32 %v239_v35, 0.0  ;;  %v304_v47 = vmax.f32 %v240_v36, 0.0  ;;  %v305_v48 = vmax.f32 %v241_v37, 0.0  ;;  %365 = vst.msk [vmem:[%s1091_s3 + $0x80] sm:$0xff] %vm348_vm0, %v300_v39  ;;  %v470_v53 = vunpack.c.h.bf16 %v558_v38 }
  0x1a   :  { %366 = vst.msk [vmem:[%s1091_s3 + $0x88] sm:$0xff] %vm348_vm0, %v301_v40  ;;  %v306_v50 = vmax.f32 %v242_v41, 0.0  ;;  %v307_v51 = vmax.f32 %v243_v42, 0.0  ;;  %367 = vst.msk [vmem:[%s1091_s3 + $0x90] sm:$0xff] %vm348_vm0, %v302_v45  ;;  %v473_v54 = vunpack.c.l.bf16 %v559_v43  ;;  %v474_v55 = vunpack.c.h.bf16 %v559_v43 }
  0x1b   :  { %368 = vst.msk [vmem:[%s1091_s3 + $0x98] sm:$0xff] %vm348_vm0, %v303_v46  ;;  %369 = vst.msk [vmem:[%s1091_s3 + $0xa0] sm:$0xff] %vm348_vm0, %v304_v47  ;;  %v477_v56 = vunpack.c.l.bf16 %v560_v44  ;;  %v478_v57 = vunpack.c.h.bf16 %v560_v44  ;;  %v173_v58 = vmul.f32 %v469_v52, %v604_v1  ;;  %v174_v59 = vmul.f32 %v470_v53, %v604_v1  ;;  %v567_v53 = vld [vmem:[%s1088_s0 + $0xa8] sm:$0xff]  }
  0x1c   :  { %370 = vst.msk [vmem:[%s1091_s3 + $0xa8] sm:$0xff] %vm348_vm0, %v305_v48  ;;  %371 = vst.msk [vmem:[%s1091_s3 + $0xb0] sm:$0xff] %vm348_vm0, %v306_v50  ;;  %v481_v60 = vunpack.c.l.bf16 %v561_v49  ;;  %v482_v61 = vunpack.c.h.bf16 %v561_v49  ;;  %v175_v62 = vmul.f32 %v473_v54, %v604_v1  ;;  %v176_v63 = vmul.f32 %v474_v55, %v604_v1  ;;  %v566_v48 = vld [vmem:[%s1088_s0 + $0xa0] sm:$0xff]   ;;  %v568_v54 = vld [vmem:[%s1088_s0 + $0xb0] sm:$0xff]  }
  0x1d   :  { %372 = vst.msk [vmem:[%s1091_s3 + $0xb8] sm:$0xff] %vm348_vm0, %v307_v51  ;;  %v177_v0 = vmul.f32 %v477_v56, %v604_v1  ;;  %v178_v2 = vmul.f32 %v478_v57, %v604_v1  ;;  %v244_v3 = vadd.f32 %v618_v7, %v173_v58  ;;  %v245_v4 = vadd.f32 %v618_v7, %v174_v59  ;;  %v569_v59 = vld [vmem:[%s1088_s0 + $0xb8] sm:$0xff]  }
  0x1e   :  { %v179_v5 = vmul.f32 %v481_v60, %v604_v1  ;;  %v180_v6 = vmul.f32 %v482_v61, %v604_v1  ;;  %v246_v8 = vadd.f32 %v618_v7, %v175_v62  ;;  %v247_v9 = vadd.f32 %v618_v7, %v176_v63 }
  0x1f   :  { %v248_v10 = vadd.f32 %v618_v7, %v177_v0  ;;  %v249_v11 = vadd.f32 %v618_v7, %v178_v2  ;;  %v308_v13 = vmax.f32 %v244_v3, 0.0  ;;  %v309_v14 = vmax.f32 %v245_v4, 0.0 }
  0x20   :  { %v250_v15 = vadd.f32 %v618_v7, %v179_v5  ;;  %v251_v16 = vadd.f32 %v618_v7, %v180_v6  ;;  %v310_v19 = vmax.f32 %v246_v8, 0.0  ;;  %v311_v20 = vmax.f32 %v247_v9, 0.0 }
  0x21   :  { %v312_v21 = vmax.f32 %v248_v10, 0.0  ;;  %v313_v22 = vmax.f32 %v249_v11, 0.0  ;;  %373 = vst.msk [vmem:[%s1091_s3 + $0xc0] sm:$0xff] %vm348_vm0, %v308_v13  ;;  %374 = vst.msk [vmem:[%s1091_s3 + $0xc8] sm:$0xff] %vm348_vm0, %v309_v14  ;;  %v485_v26 = vunpack.c.l.bf16 %v562_v12  ;;  %v486_v27 = vunpack.c.h.bf16 %v562_v12 }
  0x22   :  { %v314_v24 = vmax.f32 %v250_v15, 0.0  ;;  %v315_v25 = vmax.f32 %v251_v16, 0.0  ;;  %375 = vst.msk [vmem:[%s1091_s3 + $0xd0] sm:$0xff] %vm348_vm0, %v310_v19  ;;  %376 = vst.msk [vmem:[%s1091_s3 + $0xd8] sm:$0xff] %vm348_vm0, %v311_v20  ;;  %v489_v28 = vunpack.c.l.bf16 %v563_v17  ;;  %v490_v29 = vunpack.c.h.bf16 %v563_v17 }
  0x23   :  { %377 = vst.msk [vmem:[%s1091_s3 + $0xe0] sm:$0xff] %vm348_vm0, %v312_v21  ;;  %378 = vst.msk [vmem:[%s1091_s3 + $0xe8] sm:$0xff] %vm348_vm0, %v313_v22  ;;  %v493_v30 = vunpack.c.l.bf16 %v564_v18  ;;  %v494_v31 = vunpack.c.h.bf16 %v564_v18  ;;  %v181_v32 = vmul.f32 %v485_v26, %v604_v1  ;;  %v182_v33 = vmul.f32 %v486_v27, %v604_v1  ;;  %v570_v22 = vld [vmem:[%s1088_s0 + $0xc0] sm:$0xff]   ;;  %v571_v27 = vld [vmem:[%s1088_s0 + $0xc8] sm:$0xff]  }
  0x24   :  { %379 = vst.msk [vmem:[%s1091_s3 + $0xf0] sm:$0xff] %vm348_vm0, %v314_v24  ;;  %380 = vst.msk [vmem:[%s1091_s3 + $0xf8] sm:$0xff] %vm348_vm0, %v315_v25  ;;  %v497_v34 = vunpack.c.l.bf16 %v565_v23  ;;  %v498_v35 = vunpack.c.h.bf16 %v565_v23  ;;  %v183_v36 = vmul.f32 %v489_v28, %v604_v1  ;;  %v184_v37 = vmul.f32 %v490_v29, %v604_v1  ;;  %v572_v28 = vld [vmem:[%s1088_s0 + $0xd0] sm:$0xff]  }
  0x25   :  { %v185_v38 = vmul.f32 %v493_v30, %v604_v1  ;;  %v186_v39 = vmul.f32 %v494_v31, %v604_v1  ;;  %v252_v40 = vadd.f32 %v618_v7, %v181_v32  ;;  %v253_v41 = vadd.f32 %v618_v7, %v182_v33  ;;  %v573_v33 = vld [vmem:[%s1088_s0 + $0xd8] sm:$0xff]  }
  0x26   :  { %v187_v42 = vmul.f32 %v497_v34, %v604_v1  ;;  %v188_v43 = vmul.f32 %v498_v35, %v604_v1  ;;  %v254_v44 = vadd.f32 %v618_v7, %v183_v36  ;;  %v255_v45 = vadd.f32 %v618_v7, %v184_v37 }
  0x27   :  { %v256_v46 = vadd.f32 %v618_v7, %v185_v38  ;;  %v257_v47 = vadd.f32 %v618_v7, %v186_v39  ;;  %v316_v49 = vmax.f32 %v252_v40, 0.0  ;;  %v317_v50 = vmax.f32 %v253_v41, 0.0 }
  0x28   :  { %v258_v51 = vadd.f32 %v618_v7, %v187_v42  ;;  %v259_v52 = vadd.f32 %v618_v7, %v188_v43  ;;  %v318_v55 = vmax.f32 %v254_v44, 0.0  ;;  %v319_v56 = vmax.f32 %v255_v45, 0.0 }
  0x29   :  { %v320_v57 = vmax.f32 %v256_v46, 0.0  ;;  %v321_v58 = vmax.f32 %v257_v47, 0.0  ;;  %381 = vst.msk [vmem:[%s1091_s3 + $0x100] sm:$0xff] %vm348_vm0, %v316_v49  ;;  %382 = vst.msk [vmem:[%s1091_s3 + $0x108] sm:$0xff] %vm348_vm0, %v317_v50  ;;  %v501_v62 = vunpack.c.l.bf16 %v566_v48  ;;  %v502_v63 = vunpack.c.h.bf16 %v566_v48 }
  0x2a   :  { %v322_v60 = vmax.f32 %v258_v51, 0.0  ;;  %v323_v61 = vmax.f32 %v259_v52, 0.0  ;;  %383 = vst.msk [vmem:[%s1091_s3 + $0x110] sm:$0xff] %vm348_vm0, %v318_v55  ;;  %384 = vst.msk [vmem:[%s1091_s3 + $0x118] sm:$0xff] %vm348_vm0, %v319_v56  ;;  %v505_v0 = vunpack.c.l.bf16 %v567_v53  ;;  %v506_v2 = vunpack.c.h.bf16 %v567_v53 }
  0x2b   :  { %385 = vst.msk [vmem:[%s1091_s3 + $0x120] sm:$0xff] %vm348_vm0, %v320_v57  ;;  %386 = vst.msk [vmem:[%s1091_s3 + $0x128] sm:$0xff] %vm348_vm0, %v321_v58  ;;  %v509_v3 = vunpack.c.l.bf16 %v568_v54  ;;  %v510_v4 = vunpack.c.h.bf16 %v568_v54  ;;  %v189_v5 = vmul.f32 %v501_v62, %v604_v1  ;;  %v190_v6 = vmul.f32 %v502_v63, %v604_v1  ;;  %v574_v58 = vld [vmem:[%s1088_s0 + $0xe0] sm:$0xff]   ;;  %v575_v63 = vld [vmem:[%s1088_s0 + $0xe8] sm:$0xff]  }
  0x2c   :  { %387 = vst.msk [vmem:[%s1091_s3 + $0x130] sm:$0xff] %vm348_vm0, %v322_v60  ;;  %388 = vst.msk [vmem:[%s1091_s3 + $0x138] sm:$0xff] %vm348_vm0, %v323_v61  ;;  %v513_v8 = vunpack.c.l.bf16 %v569_v59  ;;  %v514_v9 = vunpack.c.h.bf16 %v569_v59  ;;  %v191_v10 = vmul.f32 %v505_v0, %v604_v1  ;;  %v192_v11 = vmul.f32 %v506_v2, %v604_v1  ;;  %v576_v0 = vld [vmem:[%s1088_s0 + $0xf0] sm:$0xff]  }
  0x2d   :  { %v193_v12 = vmul.f32 %v509_v3, %v604_v1  ;;  %v194_v13 = vmul.f32 %v510_v4, %v604_v1  ;;  %v260_v14 = vadd.f32 %v618_v7, %v189_v5  ;;  %v261_v15 = vadd.f32 %v618_v7, %v190_v6  ;;  %v577_v6 = vld [vmem:[%s1088_s0 + $0xf8] sm:$0xff]  }
  0x2e   :  { %v195_v16 = vmul.f32 %v513_v8, %v604_v1  ;;  %v196_v17 = vmul.f32 %v514_v9, %v604_v1  ;;  %v262_v18 = vadd.f32 %v618_v7, %v191_v10  ;;  %v263_v19 = vadd.f32 %v618_v7, %v192_v11 }
  0x2f   :  { %v264_v20 = vadd.f32 %v618_v7, %v193_v12  ;;  %v265_v21 = vadd.f32 %v618_v7, %v194_v13  ;;  %v324_v23 = vmax.f32 %v260_v14, 0.0  ;;  %v325_v24 = vmax.f32 %v261_v15, 0.0 }
  0x30   :  { %v266_v25 = vadd.f32 %v618_v7, %v195_v16  ;;  %v267_v26 = vadd.f32 %v618_v7, %v196_v17  ;;  %v326_v29 = vmax.f32 %v262_v18, 0.0  ;;  %v327_v30 = vmax.f32 %v263_v19, 0.0 }
  0x31   :  { %v328_v31 = vmax.f32 %v264_v20, 0.0  ;;  %v329_v32 = vmax.f32 %v265_v21, 0.0  ;;  %389 = vst.msk [vmem:[%s1091_s3 + $0x140] sm:$0xff] %vm348_vm0, %v324_v23  ;;  %390 = vst.msk [vmem:[%s1091_s3 + $0x148] sm:$0xff] %vm348_vm0, %v325_v24  ;;  %v517_v36 = vunpack.c.l.bf16 %v570_v22  ;;  %v518_v37 = vunpack.c.h.bf16 %v570_v22 }
  0x32   :  { %v330_v34 = vmax.f32 %v266_v25, 0.0  ;;  %v331_v35 = vmax.f32 %v267_v26, 0.0  ;;  %391 = vst.msk [vmem:[%s1091_s3 + $0x150] sm:$0xff] %vm348_vm0, %v326_v29  ;;  %392 = vst.msk [vmem:[%s1091_s3 + $0x158] sm:$0xff] %vm348_vm0, %v327_v30  ;;  %v521_v38 = vunpack.c.l.bf16 %v571_v27  ;;  %v522_v39 = vunpack.c.h.bf16 %v571_v27 }
  0x33   :  { %393 = vst.msk [vmem:[%s1091_s3 + $0x160] sm:$0xff] %vm348_vm0, %v328_v31  ;;  %394 = vst.msk [vmem:[%s1091_s3 + $0x168] sm:$0xff] %vm348_vm0, %v329_v32  ;;  %v525_v40 = vunpack.c.l.bf16 %v572_v28  ;;  %v526_v41 = vunpack.c.h.bf16 %v572_v28  ;;  %v197_v42 = vmul.f32 %v517_v36, %v604_v1  ;;  %v198_v43 = vmul.f32 %v518_v37, %v604_v1 }
  0x34   :  { %395 = vst.msk [vmem:[%s1091_s3 + $0x170] sm:$0xff] %vm348_vm0, %v330_v34  ;;  %396 = vst.msk [vmem:[%s1091_s3 + $0x178] sm:$0xff] %vm348_vm0, %v331_v35  ;;  %v529_v44 = vunpack.c.l.bf16 %v573_v33  ;;  %v530_v45 = vunpack.c.h.bf16 %v573_v33  ;;  %v199_v46 = vmul.f32 %v521_v38, %v604_v1  ;;  %v200_v47 = vmul.f32 %v522_v39, %v604_v1 }
  0x35   :  { %v201_v48 = vmul.f32 %v525_v40, %v604_v1  ;;  %v202_v49 = vmul.f32 %v526_v41, %v604_v1  ;;  %v268_v50 = vadd.f32 %v618_v7, %v197_v42  ;;  %v269_v51 = vadd.f32 %v618_v7, %v198_v43 }
  0x36   :  { %v203_v52 = vmul.f32 %v529_v44, %v604_v1  ;;  %v204_v53 = vmul.f32 %v530_v45, %v604_v1  ;;  %v270_v54 = vadd.f32 %v618_v7, %v199_v46  ;;  %v271_v55 = vadd.f32 %v618_v7, %v200_v47 }
  0x37   :  { %v272_v56 = vadd.f32 %v618_v7, %v201_v48  ;;  %v273_v57 = vadd.f32 %v618_v7, %v202_v49  ;;  %v332_v59 = vmax.f32 %v268_v50, 0.0  ;;  %v333_v60 = vmax.f32 %v269_v51, 0.0 }
  0x38   :  { %v274_v61 = vadd.f32 %v618_v7, %v203_v52  ;;  %v275_v62 = vadd.f32 %v618_v7, %v204_v53  ;;  %v334_v2 = vmax.f32 %v270_v54, 0.0  ;;  %v335_v3 = vmax.f32 %v271_v55, 0.0 }
  0x39   :  { %v336_v4 = vmax.f32 %v272_v56, 0.0  ;;  %v337_v5 = vmax.f32 %v273_v57, 0.0  ;;  %397 = vst.msk [vmem:[%s1091_s3 + $0x180] sm:$0xff] %vm348_vm0, %v332_v59  ;;  %398 = vst.msk [vmem:[%s1091_s3 + $0x188] sm:$0xff] %vm348_vm0, %v333_v60  ;;  %v533_v10 = vunpack.c.l.bf16 %v574_v58  ;;  %v534_v11 = vunpack.c.h.bf16 %v574_v58 }
  0x3a   :  { %v338_v8 = vmax.f32 %v274_v61, 0.0  ;;  %v339_v9 = vmax.f32 %v275_v62, 0.0  ;;  %399 = vst.msk [vmem:[%s1091_s3 + $0x190] sm:$0xff] %vm348_vm0, %v334_v2  ;;  %400 = vst.msk [vmem:[%s1091_s3 + $0x198] sm:$0xff] %vm348_vm0, %v335_v3  ;;  %v537_v12 = vunpack.c.l.bf16 %v575_v63  ;;  %v538_v13 = vunpack.c.h.bf16 %v575_v63 }
  0x3b   :  { %401 = vst.msk [vmem:[%s1091_s3 + $0x1a0] sm:$0xff] %vm348_vm0, %v336_v4  ;;  %402 = vst.msk [vmem:[%s1091_s3 + $0x1a8] sm:$0xff] %vm348_vm0, %v337_v5  ;;  %v541_v14 = vunpack.c.l.bf16 %v576_v0  ;;  %v542_v15 = vunpack.c.h.bf16 %v576_v0  ;;  %v205_v16 = vmul.f32 %v533_v10, %v604_v1  ;;  %v206_v17 = vmul.f32 %v534_v11, %v604_v1 }
  0x3c   :  { %403 = vst.msk [vmem:[%s1091_s3 + $0x1b0] sm:$0xff] %vm348_vm0, %v338_v8  ;;  %404 = vst.msk [vmem:[%s1091_s3 + $0x1b8] sm:$0xff] %vm348_vm0, %v339_v9  ;;  %v545_v18 = vunpack.c.l.bf16 %v577_v6  ;;  %v546_v19 = vunpack.c.h.bf16 %v577_v6  ;;  %v207_v20 = vmul.f32 %v537_v12, %v604_v1  ;;  %v208_v21 = vmul.f32 %v538_v13, %v604_v1 }
  0x3d   :  { %v209_v22 = vmul.f32 %v541_v14, %v604_v1  ;;  %v210_v23 = vmul.f32 %v542_v15, %v604_v1  ;;  %v276_v24 = vadd.f32 %v618_v7, %v205_v16  ;;  %v277_v25 = vadd.f32 %v618_v7, %v206_v17 }
  0x3e   :  { %v211_v26 = vmul.f32 %v545_v18, %v604_v1  ;;  %v212_v27 = vmul.f32 %v546_v19, %v604_v1  ;;  %v278_v28 = vadd.f32 %v618_v7, %v207_v20  ;;  %v279_v29 = vadd.f32 %v618_v7, %v208_v21 }
  0x3f   :  { %v280_v30 = vadd.f32 %v618_v7, %v209_v22  ;;  %v281_v31 = vadd.f32 %v618_v7, %v210_v23  ;;  %v340_v32 = vmax.f32 %v276_v24, 0.0  ;;  %v341_v33 = vmax.f32 %v277_v25, 0.0 }
  0x40   :  { %v282_v34 = vadd.f32 %v618_v7, %v211_v26  ;;  %v283_v35 = vadd.f32 %v618_v7, %v212_v27  ;;  %v342_v36 = vmax.f32 %v278_v28, 0.0  ;;  %v343_v37 = vmax.f32 %v279_v29, 0.0 }
  0x41   :  { %v344_v38 = vmax.f32 %v280_v30, 0.0  ;;  %v345_v39 = vmax.f32 %v281_v31, 0.0  ;;  %405 = vst.msk [vmem:[%s1091_s3 + $0x1c0] sm:$0xff] %vm348_vm0, %v340_v32  ;;  %406 = vst.msk [vmem:[%s1091_s3 + $0x1c8] sm:$0xff] %vm348_vm0, %v341_v33 }
  0x42   :  { %v346_v1 = vmax.f32 %v282_v34, 0.0  ;;  %v347_v40 = vmax.f32 %v283_v35, 0.0  ;;  %407 = vst.msk [vmem:[%s1091_s3 + $0x1d0] sm:$0xff] %vm348_vm0, %v342_v36  ;;  %408 = vst.msk [vmem:[%s1091_s3 + $0x1d8] sm:$0xff] %vm348_vm0, %v343_v37 }
  0x43   :  { %409 = vst.msk [vmem:[%s1091_s3 + $0x1e0] sm:$0xff] %vm348_vm0, %v344_v38  ;;  %410 = vst.msk [vmem:[%s1091_s3 + $0x1e8] sm:$0xff] %vm348_vm0, %v345_v39 }
  0x44   :  { %411 = vst.msk [vmem:[%s1091_s3 + $0x1f0] sm:$0xff] %vm348_vm0, %v346_v1  ;;  %412 = vst.msk [vmem:[%s1091_s3 + $0x1f8] sm:$0xff] %vm348_vm0, %v347_v40 }

// kernel: conv_bn_relu.2
= control target key start
LH: loop header
LB: loop body
LE: loop exit
PB: predicated region body
PF: predicated region fallthrough
CT: control target
= control target key end

     0   :  { %s2321_s15 = smov 0   ;;  %s2323_s16 = smov 0   ;;  %s2583_s0 = inlined_call_operand.vmem [shape: bf16[2,288,12], index: 0, kind: input, shape index: {}]   ;;  %s2584_s1 = inlined_call_operand.vmem [shape: bf16[3,12,128], index: 1, kind: input, shape index: {}]   ;;  %s2585_s2 = inlined_call_operand.vmem [shape: bf16[2,256,128], index: 2, kind: output, shape index: {0}]   ;;  %s2586_s3 = inlined_call_operand.vmem [shape: f32[2,1,128], index: 3, kind: output, shape index: {1}]   ;;  %s2587_s4 = inlined_call_operand.vmem [shape: f32[2,1,128], index: 4, kind: output, shape index: {2}]  }
   0x1   :  { %s2325_s17 = smov 0  }
   0x2 LB: > { %s27_s18 = sadd.s32 1, %s2289_s16  ;;  %p1702_p0 = scmp.ge.s32.totalorder %s2293_s17, 1  ;;  %s2293_s17 = sphi %s2325_s17, %s15_s17   ;;  %s2289_s16 = sphi %s2323_s16, %s2589_s16   ;;  %s2285_s15 = sphi %s2321_s15, %s2588_s15  }
   0x3   : > { %p29_p1 = scmp.ge.s32.totalorder %s27_s18, 2  ;;  %p181_p2 = scmp.lt.s32.totalorder %s2293_s17, 3 }
   0x5   : > { %s2591_s18 = smov (%p29_p1, %s27_s18), 0  ;;  %p182_p3 = pnand %p1702_p0, %p181_p2 }
   0x6   : > { %p217_p4 = scmp.lt.s32.totalorder (!%p182_p3), %s2285_s15, 1 }
   0x7   : > { %185 = sbr.rel (%p182_p3) target bundleno = 334 (0x14e), region = 28 }
   0xc   : > { %v2220_v0 = vld [vmem:[%s2584_s1 + $0x8] sm:$0x3f]   ;;  %vm452_vm0 = vcmask 1045504   ;;  %v2223_v2 = vld [vmem:[%s2584_s1] sm:$0x3f]   ;;  %s2593_s15 = smov (!%p217_p4, %s2285_s15), 1 }
   0xd   : > { %2191 = vmatprep.subr.msk.bf16.mxu1 %vm452_vm0, %v2220_v0  ;;  %2190 = vmatprep.subr.msk.bf16.mxu0 %vm452_vm0, %v2220_v0  ;;  %v454_v1 = vsel %vm452_vm0, %v2220_v0, 0  ;;  %v2226_v3 = vld [vmem:[%s2584_s1 + $0x10] sm:$0x3f]   ;;  %s2194_s25 = smul.u32 144, %s2593_s15  ;;  %vm403_vm1 = vcmask 97280   ;;  %v751_v9 = vsel %vm452_vm0, %v2223_v2, 0  ;;  %s2463_s5 = scalar_lea.vmem %s2586_s3, %s2593_s15 }
   0xe   : > { %2189 = vmatpush3.bf16.msra.mxu1 %v454_v1  ;;  %2087 = vmatpush3.bf16.msra.mxu0 %v454_v1  ;;  %v1088_v7 = vsel %vm452_vm0, %v2226_v3, 0  ;;  %s2469_s8 = scalar_lea.vmem %s2587_s4, %s2593_s15  ;;  %v2295_v54 = vmov 0.0   ;;  %s1907_s9 = sshll.u32 %s2593_s15, 7 }
   0xf   : > { %2192 = vmatprep.subr.msk.bf16.mxu1 %vm452_vm0, %v2223_v2  ;;  %2193 = vmatprep.subr.msk.bf16.mxu0 %vm452_vm0, %v2226_v3  ;;  %s2359_s28 = scalar_lea.vmem %s2583_s0, %s2194_s25  ;;  %1447 = vst [vmem:[%s2463_s5] sm:$0x1] %v2295_v54  ;;  %1448 = vst [vmem:[%s2469_s8] sm:$0x1] %v2295_v54  ;;  %s2527_s12 = scalar_lea.vmem %s2585_s2, %s1907_s9 }
  0x10   : > { %v2221_v4 = vld [vmem:[%s2359_s28 + $0x8] sm:$0xff]   ;;  %v2224_v6 = vld [vmem:[%s2359_s28 + $0x10] sm:$0xff]   ;;  %v2227_v10 = vld [vmem:[%s2359_s28 + $0x18] sm:$0xff]  }
  0x11   : > { %v2222_v5 = vld [vmem:[%s2359_s28 + $0x48] sm:$0xff]   ;;  %2088 = vmatprep.mubr.msk.bf16.mxu0 %vm403_vm1, %v2221_v4  ;;  %v2225_v8 = vld [vmem:[%s2359_s28 + $0x50] sm:$0xff]   ;;  %v2228_v11 = vld [vmem:[%s2359_s28 + $0x58] sm:$0xff]  }
  0x12   : > { %2104 = vmatprep.mubr.msk.bf16.mxu1 %vm403_vm1, %v2222_v5  ;;  %2089 = vmatmul.mubr.msk.bf16.vlgmr.msra.gmra.mxu0 %vm403_vm1, %v2224_v6  ;;  %v2229_v12 = vld [vmem:[%s2359_s28 + $0x20] sm:$0xff]   ;;  %v2231_v14 = vld [vmem:[%s2359_s28 + $0x28] sm:$0xff]   ;;  %v2233_v16 = vld [vmem:[%s2359_s28 + $0x30] sm:$0xff]  }
  0x13   : > { %2105 = vmatmul.mubr.msk.bf16.vlgmr.msra.gmra.mxu1 %vm403_vm1, %v2225_v8  ;;  %2155 = vmatpush3.bf16.msra.mxu0 %v1088_v7  ;;  %v2230_v13 = vld [vmem:[%s2359_s28 + $0x60] sm:$0xff]   ;;  %v2232_v15 = vld [vmem:[%s2359_s28 + $0x68] sm:$0xff]   ;;  %v2234_v17 = vld [vmem:[%s2359_s28 + $0x70] sm:$0xff]  }
  0x14   : > { %2121 = vmatpush3.bf16.msra.mxu1 %v751_v9  ;;  %2092 = vmatprep.mubr.msk.bf16.mxu0 %vm403_vm1, %v2227_v10  ;;  %v2235_v18 = vld [vmem:[%s2359_s28 + $0x38] sm:$0xff]   ;;  %v2237_v20 = vld [vmem:[%s2359_s28 + $0x40] sm:$0xff]   ;;  %v2240_v22 = vld [vmem:[%s2359_s28 + $0x10] sm:$0xff]  }
  0x15   : > { %2108 = vmatprep.mubr.msk.bf16.mxu1 %vm403_vm1, %v2228_v11  ;;  %v2236_v19 = vld [vmem:[%s2359_s28 + $0x78] sm:$0xff]   ;;  %v2238_v21 = vld [vmem:[%s2359_s28 + $0x80] sm:$0xff]   ;;  %v2241_v24 = vld [vmem:[%s2359_s28 + $0x8] sm:$0xff]  }
  0x16   : > { %v2239_v23 = vld [vmem:[%s2359_s28] sm:$0xff]   ;;  %v2242_v25 = vld [vmem:[%s2359_s28 + $0x18] sm:$0xff]   ;;  %v2243_v27 = vld [vmem:[%s2359_s28 + $0x10] sm:$0xff]  }
  0x17   : > { %v2244_v26 = vld [vmem:[%s2359_s28 + $0x20] sm:$0xff]   ;;  %v2245_v28 = vld [vmem:[%s2359_s28 + $0x18] sm:$0xff]   ;;  %v2246_v29 = vld [vmem:[%s2359_s28 + $0x28] sm:$0xff]  }
  0x18   : > { %v2248_v30 = vld [vmem:[%s2359_s28 + $0x30] sm:$0xff]   ;;  %v2247_v31 = vld [vmem:[%s2359_s28 + $0x20] sm:$0xff]   ;;  %v2250_v32 = vld [vmem:[%s2359_s28 + $0x38] sm:$0xff]  }
  0x19   : > { %v2249_v33 = vld [vmem:[%s2359_s28 + $0x28] sm:$0xff]   ;;  %v2252_v34 = vld [vmem:[%s2359_s28 + $0x40] sm:$0xff]   ;;  %v2251_v35 = vld [vmem:[%s2359_s28 + $0x30] sm:$0xff]  }
  0x1a   : > { %2093 = vmatmul.mubr.msk.bf16.gmra.mxu0 %vm403_vm1, %v2229_v12  ;;  %v2254_v36 = vld [vmem:[%s2359_s28 + $0x48] sm:$0xff]   ;;  %v2253_v37 = vld [vmem:[%s2359_s28 + $0x38] sm:$0xff]   ;;  %v2256_v38 = vld [vmem:[%s2359_s28 + $0x50] sm:$0xff]  }
  0x1b   : > { %2109 = vmatmul.mubr.msk.bf16.gmra.mxu1 %vm403_vm1, %v2230_v13  ;;  %2096 = vmatprep.mubr.msk.bf16.mxu0 %vm403_vm1, %v2231_v14  ;;  %v2255_v39 = vld [vmem:[%s2359_s28 + $0x40] sm:$0xff]   ;;  %v2258_v40 = vld [vmem:[%s2359_s28 + $0x58] sm:$0xff]   ;;  %v2257_v41 = vld [vmem:[%s2359_s28 + $0x48] sm:$0xff]  }
  0x1c   : > { %2112 = vmatprep.mubr.msk.bf16.mxu1 %vm403_vm1, %v2232_v15  ;;  %v2260_v42 = vld [vmem:[%s2359_s28 + $0x60] sm:$0xff]   ;;  %v2259_v43 = vld [vmem:[%s2359_s28 + $0x50] sm:$0xff]   ;;  %v2262_v44 = vld [vmem:[%s2359_s28 + $0x68] sm:$0xff]  }
  0x1d   : > { %v2261_v45 = vld [vmem:[%s2359_s28 + $0x58] sm:$0xff]   ;;  %v2264_v46 = vld [vmem:[%s2359_s28 + $0x70] sm:$0xff]   ;;  %v2263_v47 = vld [vmem:[%s2359_s28 + $0x60] sm:$0xff]  }
  0x1e   : > { %v2266_v48 = vld [vmem:[%s2359_s28 + $0x78] sm:$0xff]   ;;  %v2265_v49 = vld [vmem:[%s2359_s28 + $0x68] sm:$0xff]   ;;  %v2268_v50 = vld [vmem:[%s2359_s28 + $0x80] sm:$0xff]  }
  0x1f   : > { %v2267_v51 = vld [vmem:[%s2359_s28 + $0x70] sm:$0xff]   ;;  %v2270_v52 = vld [vmem:[%s2359_s28 + $0x88] sm:$0xff]   ;;  %v2269_v53 = vld [vmem:[%s2359_s28 + $0x78] sm:$0xff]  }
  0x22   : > { %2097 = vmatmul.mubr.msk.bf16.gmra.mxu0 %vm403_vm1, %v2233_v16 }
  0x23   : > { %2113 = vmatmul.mubr.msk.bf16.gmra.mxu1 %vm403_vm1, %v2234_v17  ;;  %2100 = vmatprep.mubr.msk.bf16.mxu0 %vm403_vm1, %v2235_v18 }
  0x24   : > { %2116 = vmatprep.mubr.msk.bf16.mxu1 %vm403_vm1, %v2236_v19 }
  0x2a   : > { %2101 = vmatmul.mubr.msk.bf16.gmra.mxu0 %vm403_vm1, %v2237_v20 }
  0x2b   : > { %2117 = vmatmul.mubr.msk.bf16.gmra.mxu1 %vm403_vm1, %v2238_v21  ;;  %2156 = vmatprep.mubr.msk.bf16.mxu0 %vm403_vm1, %v2240_v22 }
  0x2c   : > { %2122 = vmatprep.mubr.msk.bf16.mxu1 %vm403_vm1, %v2239_v23 }
  0x32   : > { %2157 = vmatmul.mubr.msk.bf16.vlgmr.msra.gmra.mxu0 %vm403_vm1, %v2242_v25 }
  0x33   : > { %2123 = vmatmul.mubr.msk.bf16.vlgmr.msra.gmra.mxu1 %vm403_vm1, %v2241_v24  ;;  %2160 = vmatprep.mubr.msk.bf16.mxu0 %vm403_vm1, %v2244_v26 }
  0x34   : > { %2126 = vmatprep.mubr.msk.bf16.mxu1 %vm403_vm1, %v2243_v27 }
  0x3a   : > { %2161 = vmatmul.mubr.msk.bf16.gmra.mxu0 %vm403_vm1, %v2246_v29 }
  0x3b   : > { %2127 = vmatmul.mubr.msk.bf16.gmra.mxu1 %vm403_vm1, %v2245_v28  ;;  %2164 = vmatprep.mubr.msk.bf16.mxu0 %vm403_vm1, %v2248_v30 }
  0x3c   : > { %2130 = vmatprep.mubr.msk.bf16.mxu1 %vm403_vm1, %v2247_v31 }
  0x42   : > { %2165 = vmatmul.mubr.msk.bf16.gmra.mxu0 %vm403_vm1, %v2250_v32 }
  0x43   : > { %2131 = vmatmul.mubr.msk.bf16.gmra.mxu1 %vm403_vm1, %v2249_v33  ;;  %2168 = vmatprep.mubr.msk.bf16.mxu0 %vm403_vm1, %v2252_v34 }
  0x44   : > { %2134 = vmatprep.mubr.msk.bf16.mxu1 %vm403_vm1, %v2251_v35 }
  0x4a   : > { %2169 = vmatmul.mubr.msk.bf16.gmra.mxu0 %vm403_vm1, %v2254_v36 }
  0x4b   : > { %2135 = vmatmul.mubr.msk.bf16.gmra.mxu1 %vm403_vm1, %v2253_v37  ;;  %2172 = vmatprep.mubr.msk.bf16.mxu0 %vm403_vm1, %v2256_v38 }
  0x4c   : > { %2138 = vmatprep.mubr.msk.bf16.mxu1 %vm403_vm1, %v2255_v39 }
  0x52   : > { %2173 = vmatmul.mubr.msk.bf16.gmra.mxu0 %vm403_vm1, %v2258_v40 }
  0x53   : > { %2139 = vmatmul.mubr.msk.bf16.gmra.mxu1 %vm403_vm1, %v2257_v41  ;;  %2176 = vmatprep.mubr.msk.bf16.mxu0 %vm403_vm1, %v2260_v42 }
  0x54   : > { %2142 = vmatprep.mubr.msk.bf16.mxu1 %vm403_vm1, %v2259_v43 }
  0x5a   : > { %2177 = vmatmul.mubr.msk.bf16.gmra.mxu0 %vm403_vm1, %v2262_v44 }
  0x5b   : > { %2143 = vmatmul.mubr.msk.bf16.gmra.mxu1 %vm403_vm1, %v2261_v45  ;;  %2180 = vmatprep.mubr.msk.bf16.mxu0 %vm403_vm1, %v2264_v46 }
  0x5c   : > { %2146 = vmatprep.mubr.msk.bf16.mxu1 %vm403_vm1, %v2263_v47 }
  0x62   : > { %2181 = vmatmul.mubr.msk.bf16.gmra.mxu0 %vm403_vm1, %v2266_v48 }
  0x63   : > { %2147 = vmatmul.mubr.msk.bf16.gmra.mxu1 %vm403_vm1, %v2265_v49  ;;  %2184 = vmatprep.mubr.msk.bf16.mxu0 %vm403_vm1, %v2268_v50 }
  0x64   : > { %2150 = vmatprep.mubr.msk.bf16.mxu1 %vm403_vm1, %v2267_v51 }
  0x6a   : > { %2185 = vmatmul.mubr.msk.bf16.gmra.mxu0 %vm403_vm1, %v2270_v52 }
  0x6b   : > { %2151 = vmatmul.mubr.msk.bf16.gmra.mxu1 %vm403_vm1, %v2269_v53 }
  0xd2   : > { %v2090_v55 = vpop.f32.mrf.mxu0 }
  0xd3   : > { %v2473_v56 = vpop.f32.mrf.mxu1 }
  0xd4   : > { %v490_v57 = vpop.f32.mrf.mxu0 }
  0xd5   : > { %v2475_v58 = vpop.f32.mrf.mxu1 }
  0xd6   : > { %v2091_v59 = vpop.f32.mrf.mxu0 }
  0xd7   : > { %v2477_v60 = vpop.f32.mrf.mxu1 }
  0xd8   : > { %v493_v61 = vpop.f32.mrf.mxu0 }
  0xd9   : > { %v2479_v62 = vpop.f32.mrf.mxu1 }
  0xda   : > { %v2094_v63 = vpop.f32.mrf.mxu0 }
  0xdb   : > { %v2481_v0 = vpop.f32.mrf.mxu1 }
  0xdc   : > { %v506_v1 = vpop.f32.mrf.mxu0 }
  0xdd   : > { %v2483_v2 = vpop.f32.mrf.mxu1 }
  0xde   : > { %v2095_v3 = vpop.f32.mrf.mxu0 }
  0xdf   : > { %v2485_v4 = vpop.f32.mrf.mxu1 }
  0xe0   : > { %v2487_v5 = vpop.f32.mrf.mxu0 }
  0xe1   : > { %v2489_v6 = vpop.f32.mrf.mxu1 }
  0xe2   : > { %v2491_v7 = vpop.f32.mrf.mxu0 }
  0xe3   : > { %v2493_v8 = vpop.f32.mrf.mxu1 }
  0xe4   : > { %v2495_v9 = vpop.f32.mrf.mxu0 }
  0xe5   : > { %v2497_v10 = vpop.f32.mrf.mxu1 }
  0xe6   : > { %v2499_v11 = vpop.f32.mrf.mxu0 }
  0xe7   : > { %v2501_v12 = vpop.f32.mrf.mxu1 }
  0xe8   : > { %v2503_v13 = vpop.f32.mrf.mxu0 }
  0xe9   : > { %v2505_v14 = vpop.f32.mrf.mxu1 }
  0xea   : > { %v2507_v15 = vpop.f32.mrf.mxu0 }
  0xeb   : > { %v2509_v16 = vpop.f32.mrf.mxu1 }
  0xec   : > { %v2511_v17 = vpop.f32.mrf.mxu0 }
  0xed   : > { %v2513_v18 = vpop.f32.mrf.mxu1 }
  0xee   : > { %v2515_v19 = vpop.f32.mrf.mxu0 }
  0xef   : > { %v2517_v20 = vpop.f32.mrf.mxu1 }
  0xf0   : > { %v2519_v21 = vpop.f32.mrf.mxu0 }
  0xf1   : > { %v2521_v22 = vpop.f32.mrf.mxu1 }
  0xf2   : > { %v2158_v23 = vpop.f32.mrf.mxu0 }
  0xf3   : > { %v2124_v24 = vpop.f32.mrf.mxu1 }
  0xf4   : > { %v1124_v25 = vpop.f32.mrf.mxu0  ;;  %v796_v27 = vadd.f32 %v2124_v24, %v2090_v55 }
  0xf5   : > { %v787_v26 = vpop.f32.mrf.mxu1 }
  0xf6   : > { %v788_v28 = vadd.f32 %v787_v26, %v490_v57  ;;  %v2159_v29 = vpop.f32.mrf.mxu0  ;;  %v1253_v34 = vadd.f32 %v2158_v23, %v796_v27 }
  0xf7   : > { %v2125_v30 = vpop.f32.mrf.mxu1 }
  0xf8   : > { %v799_v31 = vadd.f32 %v2125_v30, %v2091_v59  ;;  %v1127_v32 = vpop.f32.mrf.mxu0  ;;  %v1251_v35 = vadd.f32 %v1124_v25, %v788_v28  ;;  %v1492_v52 = vmul.f32 %v1253_v34, %v1253_v34 }
  0xf9   : > { %v790_v33 = vpop.f32.mrf.mxu1 }
  0xfa   : > { %v1254_v36 = vadd.f32 %v2159_v29, %v799_v31  ;;  %v791_v37 = vadd.f32 %v790_v33, %v493_v61  ;;  %v2162_v38 = vpop.f32.mrf.mxu0  ;;  %v1490_v45 = vmul.f32 %v1251_v35, %v1251_v35 }
  0xfb   : > { %v2128_v39 = vpop.f32.mrf.mxu1 }
  0xfc   : > { %v1948_v40 = vpack.c.bf16 %v1254_v36, %v1253_v34  ;;  %v1252_v41 = vadd.f32 %v1127_v32, %v791_v37  ;;  %v1140_v42 = vpop.f32.mrf.mxu0  ;;  %v812_v43 = vadd.f32 %v2128_v39, %v2094_v63  ;;  %v1493_v59 = vmul.f32 %v1254_v36, %v1254_v36 }
  0xfd   : > { %v803_v44 = vpop.f32.mrf.mxu1 }
  0xfe   : > { %2020 = vst [vmem:[%s2527_s12 + $0x8] sm:$0xff] %v1948_v40   ;;  %v1943_v46 = vpack.c.bf16 %v1252_v41, %v1251_v35  ;;  %v1450_v47 = vadd.f32 %v1252_v41, %v1251_v35  ;;  %v1491_v48 = vmul.f32 %v1252_v41, %v1252_v41  ;;  %v2163_v49 = vpop.f32.mrf.mxu0  ;;  %v804_v50 = vadd.f32 %v803_v44, %v506_v1 }
  0xff   : > { %v2129_v51 = vpop.f32.mrf.mxu1  ;;  %v1257_v61 = vadd.f32 %v2162_v38, %v812_v43 }
 0x100   : > { %1944 = vst [vmem:[%s2527_s12] sm:$0xff] %v1943_v46   ;;  %v1451_v53 = vadd.f32 %v1450_v47, %v1253_v34  ;;  %v1522_v54 = vadd.f32 %v1491_v48, %v1490_v45  ;;  %v815_v55 = vadd.f32 %v2129_v51, %v2095_v3  ;;  %v1143_v57 = vpop.f32.mrf.mxu0  ;;  %v1255_v23 = vadd.f32 %v1140_v42, %v804_v50 }
 0x101   : > { %v806_v63 = vpop.f32.mrf.mxu1  ;;  %v1496_v44 = vmul.f32 %v1257_v61, %v1257_v61 }
 0x102   : > { %v1523_v24 = vadd.f32 %v1522_v54, %v1492_v52  ;;  %v1452_v25 = vadd.f32 %v1451_v53, %v1254_v36  ;;  %v1258_v26 = vadd.f32 %v2163_v49, %v815_v55  ;;  %v807_v27 = vadd.f32 %v806_v63, %v2487_v5  ;;  %v2166_v28 = vpop.f32.mrf.mxu0 }
 0x103   : > { %v2132_v29 = vpop.f32.mrf.mxu1  ;;  %v1494_v30 = vmul.f32 %v1255_v23, %v1255_v23 }
 0x104   : > { %v1453_v1 = vadd.f32 %v1452_v25, %v1255_v23  ;;  %v1524_v31 = vadd.f32 %v1523_v24, %v1493_v59  ;;  %v1958_v32 = vpack.c.bf16 %v1258_v26, %v1257_v61  ;;  %v1156_v33 = vpop.f32.mrf.mxu0  ;;  %v1256_v3 = vadd.f32 %v1143_v57, %v807_v27 }
 0x105   : > { %v819_v34 = vpop.f32.mrf.mxu1  ;;  %v828_v37 = vadd.f32 %v2132_v29, %v2491_v7  ;;  %v1497_v51 = vmul.f32 %v1258_v26, %v1258_v26 }
 0x106   : > { %v1525_v35 = vadd.f32 %v1524_v31, %v1494_v30  ;;  %2022 = vst [vmem:[%s2527_s12 + $0x18] sm:$0xff] %v1958_v32   ;;  %v820_v38 = vadd.f32 %v819_v34, %v2495_v9  ;;  %v2167_v36 = vpop.f32.mrf.mxu0  ;;  %v1953_v39 = vpack.c.bf16 %v1256_v3, %v1255_v23  ;;  %v1454_v40 = vadd.f32 %v1453_v1, %v1256_v3 }
 0x107   : > { %v1495_v5 = vmul.f32 %v1256_v3, %v1256_v3  ;;  %v2133_v41 = vpop.f32.mrf.mxu1  ;;  %v1261_v49 = vadd.f32 %v2166_v28, %v828_v37 }
 0x108   : > { %v831_v42 = vadd.f32 %v2133_v41, %v2499_v11  ;;  %v1159_v43 = vpop.f32.mrf.mxu0  ;;  %2021 = vst [vmem:[%s2527_s12 + $0x10] sm:$0xff] %v1953_v39   ;;  %v1455_v45 = vadd.f32 %v1454_v40, %v1257_v61  ;;  %v1259_v47 = vadd.f32 %v1156_v33, %v820_v38 }
 0x109   : > { %v1526_v46 = vadd.f32 %v1525_v35, %v1495_v5  ;;  %v822_v48 = vpop.f32.mrf.mxu1  ;;  %v1500_v32 = vmul.f32 %v1261_v49, %v1261_v49 }
 0x10a   : > { %v1262_v50 = vadd.f32 %v2167_v36, %v831_v42  ;;  %v823_v7 = vadd.f32 %v822_v48, %v2503_v13  ;;  %v2170_v9 = vpop.f32.mrf.mxu0  ;;  %v1456_v53 = vadd.f32 %v1455_v45, %v1258_v26  ;;  %v1498_v23 = vmul.f32 %v1259_v47, %v1259_v47 }
 0x10b   : > { %v1527_v52 = vadd.f32 %v1526_v46, %v1496_v44  ;;  %v2136_v54 = vpop.f32.mrf.mxu1 }
 0x10c   : > { %v1968_v55 = vpack.c.bf16 %v1262_v50, %v1261_v49  ;;  %v1260_v11 = vadd.f32 %v1159_v43, %v823_v7  ;;  %v1172_v57 = vpop.f32.mrf.mxu0  ;;  %v1457_v59 = vadd.f32 %v1456_v53, %v1259_v47  ;;  %v844_v27 = vadd.f32 %v2136_v54, %v2507_v15 }
 0x10d   : > { %v1528_v61 = vadd.f32 %v1527_v52, %v1497_v51  ;;  %v835_v63 = vpop.f32.mrf.mxu1 }
 0x10e   : > { %2024 = vst [vmem:[%s2527_s12 + $0x28] sm:$0xff] %v1968_v55   ;;  %v1963_v24 = vpack.c.bf16 %v1260_v11, %v1259_v47  ;;  %v1499_v25 = vmul.f32 %v1260_v11, %v1260_v11  ;;  %v836_v13 = vadd.f32 %v835_v63, %v2511_v17  ;;  %v2171_v28 = vpop.f32.mrf.mxu0  ;;  %v1458_v1 = vadd.f32 %v1457_v59, %v1260_v11 }
 0x10f   : > { %v1529_v29 = vadd.f32 %v1528_v61, %v1498_v23  ;;  %v2137_v26 = vpop.f32.mrf.mxu1  ;;  %v1265_v37 = vadd.f32 %v2170_v9, %v844_v27  ;;  %v1501_v17 = vmul.f32 %v1262_v50, %v1262_v50 }
 0x110   : > { %2023 = vst [vmem:[%s2527_s12 + $0x20] sm:$0xff] %v1963_v24   ;;  %v847_v30 = vadd.f32 %v2137_v26, %v2515_v19  ;;  %v1175_v31 = vpop.f32.mrf.mxu0  ;;  %v1459_v33 = vadd.f32 %v1458_v1, %v1261_v49  ;;  %v1263_v34 = vadd.f32 %v1172_v57, %v836_v13 }
 0x111   : > { %v1530_v3 = vadd.f32 %v1529_v29, %v1499_v25  ;;  %v838_v35 = vpop.f32.mrf.mxu1  ;;  %v1504_v54 = vmul.f32 %v1265_v37, %v1265_v37 }
 0x112   : > { %v1266_v38 = vadd.f32 %v2171_v28, %v847_v30  ;;  %v839_v15 = vadd.f32 %v838_v35, %v2519_v21  ;;  %v2174_v36 = vpop.f32.mrf.mxu0  ;;  %v1460_v40 = vadd.f32 %v1459_v33, %v1262_v50  ;;  %v1502_v44 = vmul.f32 %v1263_v34, %v1263_v34 }
 0x113   : > { %v1531_v39 = vadd.f32 %v1530_v3, %v1500_v32  ;;  %v2140_v5 = vpop.f32.mrf.mxu1 }
 0x114   : > { %v1978_v41 = vpack.c.bf16 %v1266_v38, %v1265_v37  ;;  %v1264_v42 = vadd.f32 %v1175_v31, %v839_v15  ;;  %v1188_v19 = vpop.f32.mrf.mxu0  ;;  %v1461_v43 = vadd.f32 %v1460_v40, %v1263_v34  ;;  %v860_v49 = vadd.f32 %v2140_v5, %v2473_v56 }
 0x115   : > { %v1532_v45 = vadd.f32 %v1531_v39, %v1501_v17  ;;  %v851_v46 = vpop.f32.mrf.mxu1 }
 0x116   : > { %2026 = vst [vmem:[%s2527_s12 + $0x38] sm:$0xff] %v1978_v41   ;;  %v1973_v47 = vpack.c.bf16 %v1264_v42, %v1263_v34  ;;  %v1503_v48 = vmul.f32 %v1264_v42, %v1264_v42  ;;  %v852_v21 = vadd.f32 %v851_v46, %v2475_v58  ;;  %v2175_v7 = vpop.f32.mrf.mxu0  ;;  %v1462_v51 = vadd.f32 %v1461_v43, %v1264_v42 }
 0x117   : > { %v1533_v9 = vadd.f32 %v1532_v45, %v1502_v44  ;;  %v2141_v50 = vpop.f32.mrf.mxu1  ;;  %v1269_v23 = vadd.f32 %v2174_v36, %v860_v49  ;;  %v1505_v58 = vmul.f32 %v1266_v38, %v1266_v38 }
 0x118   : > { %2025 = vst [vmem:[%s2527_s12 + $0x30] sm:$0xff] %v1973_v47   ;;  %v863_v52 = vadd.f32 %v2141_v50, %v2477_v60  ;;  %v1191_v53 = vpop.f32.mrf.mxu0  ;;  %v1463_v55 = vadd.f32 %v1462_v51, %v1265_v37  ;;  %v1267_v57 = vadd.f32 %v1188_v19, %v852_v21 }
 0x119   : > { %v1534_v11 = vadd.f32 %v1533_v9, %v1503_v48  ;;  %v854_v59 = vpop.f32.mrf.mxu1  ;;  %v1508_v36 = vmul.f32 %v1269_v23, %v1269_v23 }
 0x11a   : > { %v1270_v61 = vadd.f32 %v2175_v7, %v863_v52  ;;  %v855_v56 = vadd.f32 %v854_v59, %v2479_v62  ;;  %v2178_v63 = vpop.f32.mrf.mxu0  ;;  %v1464_v25 = vadd.f32 %v1463_v55, %v1266_v38  ;;  %v1506_v1 = vmul.f32 %v1267_v57, %v1267_v57 }
 0x11b   : > { %v1535_v24 = vadd.f32 %v1534_v11, %v1504_v54  ;;  %v2144_v27 = vpop.f32.mrf.mxu1 }
 0x11c   : > { %v1988_v13 = vpack.c.bf16 %v1270_v61, %v1269_v23  ;;  %v1268_v28 = vadd.f32 %v1191_v53, %v855_v56  ;;  %v1204_v60 = vpop.f32.mrf.mxu0  ;;  %v1465_v29 = vadd.f32 %v1464_v25, %v1267_v57  ;;  %v876_v33 = vadd.f32 %v2144_v27, %v2481_v0 }
 0x11d   : > { %v1536_v26 = vadd.f32 %v1535_v24, %v1505_v58  ;;  %v867_v30 = vpop.f32.mrf.mxu1 }
 0x11e   : > { %2028 = vst [vmem:[%s2527_s12 + $0x48] sm:$0xff] %v1988_v13   ;;  %v1983_v31 = vpack.c.bf16 %v1268_v28, %v1267_v57  ;;  %v1507_v32 = vmul.f32 %v1268_v28, %v1268_v28  ;;  %v868_v62 = vadd.f32 %v867_v30, %v2483_v2  ;;  %v2179_v3 = vpop.f32.mrf.mxu0  ;;  %v1466_v35 = vadd.f32 %v1465_v29, %v1268_v28 }
 0x11f   : > { %v1537_v34 = vadd.f32 %v1536_v26, %v1506_v1  ;;  %v2145_v37 = vpop.f32.mrf.mxu1  ;;  %v1273_v41 = vadd.f32 %v2178_v63, %v876_v33  ;;  %v1509_v2 = vmul.f32 %v1270_v61, %v1270_v61 }
 0x120   : > { %2027 = vst [vmem:[%s2527_s12 + $0x40] sm:$0xff] %v1983_v31   ;;  %v879_v38 = vadd.f32 %v2145_v37, %v2485_v4  ;;  %v1207_v15 = vpop.f32.mrf.mxu0  ;;  %v1467_v17 = vadd.f32 %v1466_v35, %v1269_v23  ;;  %v1271_v40 = vadd.f32 %v1204_v60, %v868_v62 }
 0x121   : > { %v1538_v39 = vadd.f32 %v1537_v34, %v1507_v32  ;;  %v870_v5 = vpop.f32.mrf.mxu1  ;;  %v1512_v59 = vmul.f32 %v1273_v41, %v1273_v41 }
 0x122   : > { %v1274_v42 = vadd.f32 %v2179_v3, %v879_v38  ;;  %v871_v0 = vadd.f32 %v870_v5, %v2489_v6  ;;  %v2182_v19 = vpop.f32.mrf.mxu0  ;;  %v1468_v44 = vadd.f32 %v1467_v17, %v1270_v61  ;;  %v1510_v49 = vmul.f32 %v1271_v40, %v1271_v40 }
 0x123   : > { %v1539_v43 = vadd.f32 %v1538_v39, %v1508_v36  ;;  %v2148_v45 = vpop.f32.mrf.mxu1 }
 0x124   : > { %v1998_v46 = vpack.c.bf16 %v1274_v42, %v1273_v41  ;;  %v1272_v47 = vadd.f32 %v1207_v15, %v871_v0  ;;  %v1220_v4 = vpop.f32.mrf.mxu0  ;;  %v1469_v48 = vadd.f32 %v1468_v44, %v1271_v40  ;;  %v892_v50 = vadd.f32 %v2148_v45, %v2493_v8 }
 0x125   : > { %v1540_v21 = vadd.f32 %v1539_v43, %v1509_v2  ;;  %v883_v7 = vpop.f32.mrf.mxu1 }
 0x126   : > { %2030 = vst [vmem:[%s2527_s12 + $0x58] sm:$0xff] %v1998_v46   ;;  %v1993_v9 = vpack.c.bf16 %v1272_v47, %v1271_v40  ;;  %v1511_v51 = vmul.f32 %v1272_v47, %v1272_v47  ;;  %v884_v6 = vadd.f32 %v883_v7, %v2497_v10  ;;  %v2183_v52 = vpop.f32.mrf.mxu0  ;;  %v1470_v54 = vadd.f32 %v1469_v48, %v1272_v47 }
 0x127   : > { %v1541_v53 = vadd.f32 %v1540_v21, %v1510_v49  ;;  %v2149_v55 = vpop.f32.mrf.mxu1  ;;  %v1277_v58 = vadd.f32 %v2182_v19, %v892_v50  ;;  %v1513_v10 = vmul.f32 %v1274_v42, %v1274_v42 }
 0x128   : > { %2029 = vst [vmem:[%s2527_s12 + $0x50] sm:$0xff] %v1993_v9   ;;  %v895_v11 = vadd.f32 %v2149_v55, %v2501_v12  ;;  %v1223_v57 = vpop.f32.mrf.mxu0  ;;  %v1471_v23 = vadd.f32 %v1470_v54, %v1273_v41  ;;  %v1275_v56 = vadd.f32 %v1220_v4, %v884_v6 }
 0x129   : > { %v1542_v61 = vadd.f32 %v1541_v53, %v1511_v51  ;;  %v886_v63 = vpop.f32.mrf.mxu1  ;;  %v1516_v15 = vmul.f32 %v1277_v58, %v1277_v58 }
 0x12a   : > { %v1278_v24 = vadd.f32 %v2183_v52, %v895_v11  ;;  %v887_v8 = vadd.f32 %v886_v63, %v2505_v14  ;;  %v2186_v25 = vpop.f32.mrf.mxu0  ;;  %v1472_v13 = vadd.f32 %v1471_v23, %v1274_v42  ;;  %v1514_v26 = vmul.f32 %v1275_v56, %v1275_v56 }
 0x12b   : > { %v1543_v27 = vadd.f32 %v1542_v61, %v1512_v59  ;;  %v2152_v28 = vpop.f32.mrf.mxu1  ;;  %v1449_v61 = vld [vmem:[%s2463_s5] sm:$0x1] }
 0x12c   : > { %v2008_v60 = vpack.c.bf16 %v1278_v24, %v1277_v58  ;;  %v1276_v29 = vadd.f32 %v1223_v57, %v887_v8  ;;  %v1236_v12 = vpop.f32.mrf.mxu0  ;;  %v1473_v1 = vadd.f32 %v1472_v13, %v1275_v56  ;;  %v908_v62 = vadd.f32 %v2152_v28, %v2509_v16 }
 0x12d   : > { %v1544_v30 = vadd.f32 %v1543_v27, %v1513_v10  ;;  %v899_v31 = vpop.f32.mrf.mxu1  ;;  %v1517_v42 = vmul.f32 %v1278_v24, %v1278_v24 }
 0x12e   : > { %2032 = vst [vmem:[%s2527_s12 + $0x68] sm:$0xff] %v2008_v60   ;;  %v2003_v32 = vpack.c.bf16 %v1276_v29, %v1275_v56  ;;  %v1515_v33 = vmul.f32 %v1276_v29, %v1276_v29  ;;  %v900_v14 = vadd.f32 %v899_v31, %v2513_v18  ;;  %v1474_v34 = vadd.f32 %v1473_v1, %v1276_v29  ;;  %v2187_v37 = vpop.f32.mrf.mxu0 }
 0x12f   : > { %v1545_v3 = vadd.f32 %v1544_v30, %v1514_v26  ;;  %v2153_v35 = vpop.f32.mrf.mxu1  ;;  %v1281_v5 = vadd.f32 %v2186_v25, %v908_v62 }
 0x130   : > { %2031 = vst [vmem:[%s2527_s12 + $0x60] sm:$0xff] %v2003_v32   ;;  %v911_v38 = vadd.f32 %v2153_v35, %v2517_v20  ;;  %v1475_v36 = vadd.f32 %v1474_v34, %v1277_v58  ;;  %v1279_v39 = vadd.f32 %v1236_v12, %v900_v14  ;;  %v1239_v19 = vpop.f32.mrf.mxu0  ;;  %v1489_v58 = vld [vmem:[%s2469_s8] sm:$0x1] }
 0x131   : > { %v1546_v17 = vadd.f32 %v1545_v3, %v1515_v33  ;;  %v902_v40 = vpop.f32.mrf.mxu1  ;;  %v1520_v49 = vmul.f32 %v1281_v5, %v1281_v5 }
 0x132   : > { %v1282_v41 = vadd.f32 %v2187_v37, %v911_v38  ;;  %v903_v16 = vadd.f32 %v902_v40, %v2521_v22  ;;  %v1476_v0 = vadd.f32 %v1475_v36, %v1278_v24  ;;  %v1518_v45 = vmul.f32 %v1279_v39, %v1279_v39 }
 0x133   : > { %v1547_v18 = vadd.f32 %v1546_v17, %v1516_v15 }
 0x134   : > { %v2018_v2 = vpack.c.bf16 %v1282_v41, %v1281_v5  ;;  %v1280_v43 = vadd.f32 %v1239_v19, %v903_v16  ;;  %v1477_v44 = vadd.f32 %v1476_v0, %v1279_v39  ;;  %v1521_v22 = vmul.f32 %v1282_v41, %v1282_v41 }
 0x135   : > { %v1548_v20 = vadd.f32 %v1547_v18, %v1517_v42 }
 0x136   : > { %2034 = vst [vmem:[%s2527_s12 + $0x78] sm:$0xff] %v2018_v2   ;;  %v2013_v46 = vpack.c.bf16 %v1280_v43, %v1279_v39  ;;  %v1519_v47 = vmul.f32 %v1280_v43, %v1280_v43  ;;  %v1478_v48 = vadd.f32 %v1477_v44, %v1280_v43 }
 0x137   : > { %v1549_v4 = vadd.f32 %v1548_v20, %v1518_v45 }
 0x138   : > { %2033 = vst [vmem:[%s2527_s12 + $0x70] sm:$0xff] %v2013_v46   ;;  %v1479_v21 = vadd.f32 %v1478_v48, %v1281_v5 }
 0x139   : > { %v1550_v7 = vadd.f32 %v1549_v4, %v1519_v47 }
 0x13a   : > { %v1480_v9 = vadd.f32 %v1479_v21, %v1282_v41 }
 0x13b   : > { %v1551_v51 = vadd.f32 %v1550_v7, %v1520_v49 }
 0x13c   : > { %v1481_v50 = vrot.slane %v1480_v9, 4 }
 0x13d   : > { %v1552_v6 = vadd.f32 %v1551_v51, %v1521_v22 }
 0x13e   : > { %v1482_v52 = vadd.f32 %v1481_v50, %v1480_v9 }
 0x13f   : > { %v1553_v53 = vrot.slane %v1552_v6, 4 }
 0x140   : > { %v1483_v54 = vrot.slane %v1482_v52, 2 }
 0x141   : > { %v1554_v55 = vadd.f32 %v1553_v53, %v1552_v6 }
 0x142   : > { %v1484_v11 = vadd.f32 %v1483_v54, %v1482_v52 }
 0x143   : > { %v1555_v57 = vrot.slane %v1554_v55, 2 }
 0x144   : > { %v1485_v59 = vrot.slane %v1484_v11, 1 }
 0x145   : > { %v1556_v23 = vadd.f32 %v1555_v57, %v1554_v55 }
 0x146   : > { %v1486_v56 = vadd.f32 %v1485_v59, %v1484_v11 }
 0x147   : > { %v1557_v63 = vrot.slane %v1556_v23, 1 }
 0x148   : > { %v1487_v24 = vadd.f32 %v1486_v56, %v1449_v61 }
 0x149   : > { %v1558_v8 = vadd.f32 %v1557_v63, %v1556_v23 }
 0x14a   : > { %1488 = vst [vmem:[%s2463_s5] sm:$0x1] %v1487_v24 }
 0x14b   : > { %v1559_v25 = vadd.f32 %v1558_v8, %v1489_v58 }
 0x14d   : > { %1560 = vst [vmem:[%s2469_s8] sm:$0x1] %v1559_v25 }
 0x14e PF: > { %s15_s17 = sadd.s32 1, %s2293_s17   ;;  %s2588_s15 = smov %s2289_s16 }
 0x14f   : > { %p12_p5 = scmp.ge.s32.totalorder %s15_s17, 4   ;;  %s2589_s16 = smov %s2591_s18 }
 0x151   :  { %14 = sbr.rel (!%p12_p5) target bundleno = 2 (0x2), region = 91 }

</bundles_post_ra>
